<compile_context>
chip_gen: v7x
topology: tpu7x:2x2x1
jax: 0.10.0
libtpu: 0.0.40
codegen_flags: <defaults>
</compile_context>

<pallas_src>
import jax
import jax.numpy as jnp
from jax import lax
from jax.experimental import pallas as pl
from jax.experimental.pallas import tpu as pltpu


# ---------------------------------------------------------------------------
# Pallas kernel
# ---------------------------------------------------------------------------
def _make_event_warping_kernel(H, W, KE, NC, HT, NH, n_passes, flow_scaling):
    max_ts = float(n_passes)
    inv_max_ts = 1.0 / max_ts
    row_pad = (NH * HT != H)          # last H tile contains virtual rows >= H

    def kernel(ts_ref, ys_ref, xs_ref, pp_ref, pn_ref, fy_ref, fx_ref, out_ref):
        # loop-invariant iotas, hoisted once (JAX does not CSE broadcasts)
        yiota = lax.broadcasted_iota(jnp.int32, (HT, KE), 0).astype(jnp.float32)
        xline = lax.broadcasted_iota(jnp.int32, (W, KE), 0).astype(jnp.float32)
        if row_pad:
            riota = lax.broadcasted_iota(jnp.int32, (HT, 1), 0).astype(jnp.float32)

        def direction_loss(tref, backward):
            def h_body(ht, carry):
                sq, nz = carry
                row0 = (ht * HT).astype(jnp.float32)

                def k_body(kc, img):
                    ts = ts_ref[0, pl.ds(kc, 1), :]          # [1, KE]
                    ys = ys_ref[0, pl.ds(kc, 1), :]
                    xs = xs_ref[0, pl.ds(kc, 1), :]
                    pp = pp_ref[0, pl.ds(kc, 1), :]          # pos-polarity mask
                    pn = pn_ref[0, pl.ds(kc, 1), :]          # neg-polarity mask
                    fy = fy_ref[0, 0, pl.ds(kc, 1), :]       # event flow (y)
                    fx = fx_ref[0, 0, pl.ds(kc, 1), :]       # event flow (x)

                    dtf = tref - ts
                    wy = ys + dtf * fy * flow_scaling        # warped y
                    wx = xs + dtf * fx * flow_scaling        # warped x
                    ty = jnp.floor(wy)
                    dy = wy - ty                             # bottom-corner weight
                    lx = jnp.floor(wx)
                    dx = wx - lx                             # right-corner weight
                    tw = (max_ts - ts) if backward else ts

                    # y-interpolation one-hot for this H tile  [HT, KE]
                    yline = yiota + row0
                    a_y = (jnp.where(yline == ty, 1.0 - dy, 0.0)
                           + jnp.where(yline == ty + 1.0, dy, 0.0))
                    # channels: [cnt_pos, cnt_neg, ts_pos, ts_neg]  -> [4*HT, KE]
                    lhs = jnp.concatenate(
                        [pp * a_y, pn * a_y, (tw * pp) * a_y, (tw * pn) * a_y],
                        axis=0).astype(jnp.bfloat16)
                    # x-interpolation one-hot, events on lanes  [W, KE]
                    rhs_t = (jnp.where(xline == lx, 1.0 - dx, 0.0)
                             + jnp.where(xline == lx + 1.0, dx, 0.0)
                             ).astype(jnp.bfloat16)

                    # contract over events (RHS transposed operand) -> [4*HT, W]
                    return img + lax.dot_general(
                        lhs, rhs_t, (((1,), (1,)), ((), ())),
                        preferred_element_type=jnp.float32)

                img = lax.fori_loop(0, NC, k_body,
                                    jnp.zeros((4 * HT, W), jnp.float32))

                cp = img[0:HT]
                cn = img[HT:2 * HT]
                tp = img[2 * HT:3 * HT]
                tn = img[3 * HT:4 * HT]
                avg_p = tp * pl.reciprocal(cp + 1e-9, approx=True) * inv_max_ts
                avg_n = tn * pl.reciprocal(cn + 1e-9, approx=True) * inv_max_ts
                nz_px = ((cp + cn) > 0.0).astype(jnp.float32)
                if row_pad:
                    rmask = ((riota + row0) < float(H)).astype(jnp.float32)
                    avg_p = avg_p * rmask
                    avg_n = avg_n * rmask
                    nz_px = nz_px * rmask
                sq = sq + jnp.sum(avg_p * avg_p) + jnp.sum(avg_n * avg_n)
                nz = nz + jnp.sum(nz_px)
                return sq, nz

            zero = jnp.zeros((), jnp.float32)
            sq, nz = lax.fori_loop(0, NH, h_body, (zero, zero))
            # loss_scaling=True (guard empty frames to avoid NaN)
            return sq / jnp.maximum(nz, 1.0)

        fw_loss = direction_loss(max_ts, backward=False)
        bw_loss = direction_loss(0.0, backward=True)
        out_ref[...] = jnp.broadcast_to(fw_loss + bw_loss, (1, 1, 1, 128))

    return kernel


def _vmem_limit_bytes():
    cap = 128 * 1024 * 1024
    try:
        cap = int(getattr(pltpu.get_tpu_info(), "vmem_capacity_bytes", cap))
    except Exception:
        pass
    # half the physical budget, capped: 64 MiB on v5e/v6e, ~32 MiB on v7x
    return int(min(cap // 2, 64 * 1024 * 1024))


# ---------------------------------------------------------------------------
# Charbonnier flow smoothness (cold path, plain XLA in the wrapper)
# ---------------------------------------------------------------------------
def _charb_sum(a, b):
    d = a + b
    return jnp.sum(jnp.sqrt(d * d + 1e-6))


def _smoothness(fmx, fmy, n_passes):
    """fmx/fmy: [B, passes, H, W]."""
    s = (_charb_sum(fmx[:, :, :, :-1] - fmx[:, :, :, 1:],
                    fmy[:, :, :, :-1] - fmy[:, :, :, 1:]) +
         _charb_sum(fmx[:, :, :-1, :] - fmx[:, :, 1:, :],
                    fmy[:, :, :-1, :] - fmy[:, :, 1:, :]) +
         _charb_sum(fmx[:, :, :-1, :-1] - fmx[:, :, 1:, 1:],
                    fmy[:, :, :-1, :-1] - fmy[:, :, 1:, 1:]) +
         _charb_sum(fmx[:, :, 1:, :-1] - fmx[:, :, :-1, 1:],
                    fmy[:, :, 1:, :-1] - fmy[:, :, :-1, 1:]))
    if n_passes > 1:
        s = s + _charb_sum(fmx[:, :-1] - fmx[:, 1:], fmy[:, :-1] - fmy[:, 1:])
    return s / 5.0 / float(n_passes)


# ---------------------------------------------------------------------------
# Wrapper (forward() of EventWarping)
# ---------------------------------------------------------------------------
def event_warping_loss(event_list, flow_list_ev, pol_mask,
                       flow_maps_x, flow_maps_y,
                       n_passes, res, flow_scaling, weight):
    B, Ne0, _ = event_list.shape
    H, W = res
    S = len(flow_list_ev)

    # event axis: pad to a multiple of 128 and split into [NC, KE] sublane chunks
    Ne1 = max(128, ((Ne0 + 127) // 128) * 128)
    KE = min(2048, Ne1)
    NC = -(-Ne1 // KE)
    Ne = NC * KE
    HT = min(128, ((H + 7) // 8) * 8)
    NH = -(-H // HT)

    def chunks(x):                                       # [B, Ne0] -> [B, NC, KE]
        x = x.astype(jnp.float32)
        x = jnp.pad(x, ((0, 0), (0, Ne - Ne0)))          # padding events: pp=pn=0
        return x.reshape(B, NC, KE)

    ts = chunks(event_list[:, :, 0])
    ys = chunks(event_list[:, :, 1])
    xs = chunks(event_list[:, :, 2])
    pp = chunks(pol_mask[:, :, 0])
    pn = chunks(pol_mask[:, :, 1])
    fy = jnp.stack([chunks(f[:, :, 0]) for f in flow_list_ev], axis=0)  # [S,B,NC,KE]
    fx = jnp.stack([chunks(f[:, :, 1]) for f in flow_list_ev], axis=0)

    kernel = _make_event_warping_kernel(H, W, KE, NC, HT, NH, n_passes,
                                        float(flow_scaling))

    ev_spec = pl.BlockSpec((1, NC, KE), lambda b, s: (b, 0, 0))      # s-invariant
    fl_spec = pl.BlockSpec((1, 1, NC, KE), lambda b, s: (s, b, 0, 0))
    out_spec = pl.BlockSpec((1, 1, 1, 128), lambda b, s: (s, b, 0, 0))

    macs = 2 * (4 * NH * HT) * Ne * W * B * S
    cost = pl.CostEstimate(
        flops=int(2 * macs),
        transcendentals=int(2 * 2 * NH * HT * W * B * S),
        bytes_accessed=int(4 * (5 * B * Ne + 2 * S * B * Ne + S * B * 128)))

    out = pl.pallas_call(
        kernel,
        out_shape=jax.ShapeDtypeStruct((S, B, 1, 128), jnp.float32),
        grid_spec=pltpu.PrefetchScalarGridSpec(
            num_scalar_prefetch=0,
            grid=(B, S),
            in_specs=[ev_spec] * 5 + [fl_spec] * 2,
            out_specs=out_spec),
        compiler_params=pltpu.CompilerParams(
            dimension_semantics=("parallel", "parallel"),
            vmem_limit_bytes=_vmem_limit_bytes()),
        cost_estimate=cost,
    )(ts, ys, xs, pp, pn, fy, fx)

    contrast = jnp.sum(out[:, :, 0, 0], axis=1)                      # [S]
    smooth = jnp.stack([
        _smoothness(flow_maps_x[i].astype(jnp.float32),
                    flow_maps_y[i].astype(jnp.float32), n_passes)
        for i in range(S)])                                           # [S]
    return jnp.sum(contrast + float(weight) * smooth) / S


# ---------------------------------------------------------------------------
# EventWarping state handling (plain-JAX glue, mirrors event_flow_association)
# ---------------------------------------------------------------------------
class EventWarpingJAX:
    # TODO(synk): smoothing_mask=True / overwrite_intermediate=True paths are not
    # implemented (the module's config defaults are False, so forward() matches).
    def __init__(self, res, flow_scaling=None, weight=0.001):
        self.res = res
        self.flow_scaling = flow_scaling if flow_scaling is not None else max(res)
        self.weight = weight
        self._passes = 0
        self._event_list = None
        self._flow_list = None
        self._flow_maps_x = None
        self._flow_maps_y = None
        self._pol_mask_list = None

    def event_flow_association(self, flow_list, event_list, pol_mask,
                               event_mask=None):
        H, W = self.res
        B = event_list.shape[0]
        flow_idx = (event_list[:, :, 1] * W + event_list[:, :, 2]).astype(jnp.int32)

        if self._flow_list is None:
            self._flow_list = []
        for i, flow in enumerate(flow_list):
            flat = flow.reshape(B, 2, H * W)
            ev_fy = jnp.take_along_axis(flat[:, 1, :], flow_idx, axis=1)
            ev_fx = jnp.take_along_axis(flat[:, 0, :], flow_idx, axis=1)
            ev_flow = jnp.stack([ev_fy, ev_fx], axis=2)     # (y, x) like torch
            if i == len(self._flow_list):
                self._flow_list.append(ev_flow)
            else:
                self._flow_list[i] = jnp.concatenate(
                    [self._flow_list[i], ev_flow], axis=1)

        ev = event_list.at[:, :, 0:1].add(float(self._passes))
        self._event_list = ev if self._event_list is None else jnp.concatenate(
            [self._event_list, ev], axis=1)

        self._pol_mask_list = pol_mask if self._pol_mask_list is None else \
            jnp.concatenate([self._pol_mask_list, pol_mask], axis=1)

        if self._flow_maps_x is None:
            self._flow_maps_x = []
            self._flow_maps_y = []
        for i, flow in enumerate(flow_list):
            if i == len(self._flow_maps_x):
                self._flow_maps_x.append(flow[:, 0:1])
                self._flow_maps_y.append(flow[:, 1:2])
            else:
                self._flow_maps_x[i] = jnp.concatenate(
                    [self._flow_maps_x[i], flow[:, 0:1]], axis=1)
                self._flow_maps_y[i] = jnp.concatenate(
                    [self._flow_maps_y[i], flow[:, 1:2]], axis=1)
        self._passes += 1

    def forward(self):
        return event_warping_loss(self._event_list, self._flow_list,
                                  self._pol_mask_list, self._flow_maps_x,
                                  self._flow_maps_y, self._passes, self.res,
                                  self.flow_scaling, self.weight)


# ---------------------------------------------------------------------------
# Pure-JAX reference (for correctness check)
# ---------------------------------------------------------------------------
def reference_loss(event_list, flow_list_ev, pol_mask, flow_maps_x, flow_maps_y,
                   n_passes, res, flow_scaling, weight):
    H, W = res
    B = event_list.shape[0]
    max_ts = float(n_passes)
    ts = event_list[:, :, 0:1]
    yx = event_list[:, :, 1:3]
    pol4 = jnp.concatenate([pol_mask] * 4, axis=1)
    ts4 = jnp.concatenate([ts] * 4, axis=1)
    loss = 0.0
    for ev_flow, fmx, fmy in zip(flow_list_ev, flow_maps_x, flow_maps_y):
        def iwe_terms(tref, tsw):
            warped = yx + (tref - ts) * ev_flow * flow_scaling
            top_y = jnp.floor(warped[:, :, 0:1]); bot_y = top_y + 1
            left_x = jnp.floor(warped[:, :, 1:2]); right_x = left_x + 1
            idx = jnp.concatenate([
                jnp.concatenate([top_y, left_x], axis=2),
                jnp.concatenate([top_y, right_x], axis=2),
                jnp.concatenate([bot_y, left_x], axis=2),
                jnp.concatenate([bot_y, right_x], axis=2)], axis=1)
            warped4 = jnp.concatenate([warped] * 4, axis=1)
            weights = jnp.maximum(0.0, 1.0 - jnp.abs(warped4 - idx))
            mask = ((idx[:, :, 0:1] >= 0) & (idx[:, :, 0:1] < H) &
                    (idx[:, :, 1:2] >= 0) & (idx[:, :, 1:2] < W)).astype(jnp.float32)
            idx = idx * mask
            weights = jnp.prod(weights, axis=-1, keepdims=True) * mask
            flat_idx = (idx[:, :, 0] * W + idx[:, :, 1]).astype(jnp.int32)

            def scatter(w):
                z = jnp.zeros((B, H * W), jnp.float32)
                return jax.vmap(lambda o, i, v: o.at[i].add(v))(z, flat_idx, w[:, :, 0])

            iwe_pos = scatter(weights * pol4[:, :, 0:1])
            iwe_neg = scatter(weights * pol4[:, :, 1:2])
            pos_avg = scatter(weights * tsw * pol4[:, :, 0:1]) / (iwe_pos + 1e-9) / max_ts
            neg_avg = scatter(weights * tsw * pol4[:, :, 1:2]) / (iwe_neg + 1e-9) / max_ts
            l = jnp.sum(pos_avg ** 2, axis=1) + jnp.sum(neg_avg ** 2, axis=1)
            nz = jnp.sum(((iwe_pos + iwe_neg) > 0).astype(jnp.float32), axis=1)
            return jnp.sum(l / nz)

        fw = iwe_terms(max_ts, ts4)
        bw = iwe_terms(0.0, max_ts - ts4)

        def charb(a, b):
            return jnp.sum(jnp.sqrt((a + b) ** 2 + 1e-6))

        s = (charb(fmx[:, :, :, :-1] - fmx[:, :, :, 1:], fmy[:, :, :, :-1] - fmy[:, :, :, 1:]) +
             charb(fmx[:, :, :-1, :] - fmx[:, :, 1:, :], fmy[:, :, :-1, :] - fmy[:, :, 1:, :]) +
             charb(fmx[:, :, :-1, :-1] - fmx[:, :, 1:, 1:], fmy[:, :, :-1, :-1] - fmy[:, :, 1:, 1:]) +
             charb(fmx[:, :, 1:, :-1] - fmx[:, :, :-1, 1:], fmy[:, :, 1:, :-1] - fmy[:, :, :-1, 1:]))
        if n_passes > 1:
            s = s + charb(fmx[:, :-1] - fmx[:, 1:], fmy[:, :-1] - fmy[:, 1:])
        s = s / 5.0 / n_passes
        loss = loss + fw + bw + weight * s
    return loss / len(flow_list_ev)


# ---------------------------------------------------------------------------
if __name__ == "__main__":
    key = jax.random.PRNGKey(0)
    B, N, H, W = 2, 16, 16, 16          # batch, events-per-pass, resolution
    res = (H, W)
    model = EventWarpingJAX(res, flow_scaling=max(res), weight=0.001)

    # two accumulated passes, two flow "scales" per pass (both at full res)
    for p in range(2):
        key, k1, k2, k3, k4, k5, k6 = jax.random.split(key, 7)
        ts = jax.random.uniform(k1, (B, N, 1), jnp.float32)
        ys = jax.random.randint(k2, (B, N, 1), 0, H).astype(jnp.float32)
        xs = jax.random.randint(k3, (B, N, 1), 0, W).astype(jnp.float32)
        pol = jax.random.randint(k4, (B, N, 1), 0, 2).astype(jnp.float32)
        event_list = jnp.concatenate([ts, ys, xs, pol * 2.0 - 1.0], axis=2)  # (ts,y,x,p)
        pol_mask = jnp.concatenate([pol, 1.0 - pol], axis=2)                 # (pos,neg)
        flow_list = [0.15 * jax.random.normal(k5, (B, 2, H, W), jnp.float32),
                     0.15 * jax.random.normal(k6, (B, 2, H, W), jnp.float32)]
        model.event_flow_association(flow_list, event_list, pol_mask)

    loss = model.forward()
    jax.block_until_ready(loss)

    ref = reference_loss(model._event_list, model._flow_list, model._pol_mask_list,
                         model._flow_maps_x, model._flow_maps_y, model._passes,
                         res, model.flow_scaling, model.weight)
    # bf16 MXU operands + approximate reciprocal -> slightly looser tolerance
    assert jnp.allclose(loss, ref, rtol=3e-2, atol=1e-3), (float(loss), float(ref))
    print("KERNEL_OK")
</pallas_src>

<mosaic_0001>
module attributes {stable_mosaic.version = 11 : i64} {
  func.func @kernel(%arg0: i32, %arg1: i32, %arg2: memref<1x1x128xf32, #tpu.memory_space<vmem>>, %arg3: memref<1x1x128xf32, #tpu.memory_space<vmem>>, %arg4: memref<1x1x128xf32, #tpu.memory_space<vmem>>, %arg5: memref<1x1x128xf32, #tpu.memory_space<vmem>>, %arg6: memref<1x1x128xf32, #tpu.memory_space<vmem>>, %arg7: memref<1x1x1x128xf32, #tpu.memory_space<vmem>>, %arg8: memref<1x1x1x128xf32, #tpu.memory_space<vmem>>, %arg9: memref<1x1x1x128xf32, #tpu.memory_space<vmem>>) attributes {dimension_semantics = [#tpu.dimension_semantics<parallel>, #tpu.dimension_semantics<parallel>], iteration_bounds = array<i64: 2, 2>, scalar_prefetch = 0 : i64, scratch_operands = 0 : i64, tpu.core_type = #tpu.core_type<tc>, window_params = [{transform_indices = @transform_0, window_bounds = array<i64: 1, 1, 128>}, {transform_indices = @transform_1, window_bounds = array<i64: 1, 1, 128>}, {transform_indices = @transform_2, window_bounds = array<i64: 1, 1, 128>}, {transform_indices = @transform_3, window_bounds = array<i64: 1, 1, 128>}, {transform_indices = @transform_4, window_bounds = array<i64: 1, 1, 128>}, {transform_indices = @transform_5, window_bounds = array<i64: 1, 1, 1, 128>}, {transform_indices = @transform_6, window_bounds = array<i64: 1, 1, 1, 128>}, {transform_indices = @transform_7, window_bounds = array<i64: 1, 1, 1, 128>}]} {
    %0 = tpu.iota {dimensions = array<i32: 0>} : vector<16x128xi32>
    %1 = arith.sitofp %0 : vector<16x128xi32> to vector<16x128xf32>
    %2 = tpu.iota {dimensions = array<i32: 0>} : vector<16x128xi32>
    %3 = arith.sitofp %2 : vector<16x128xi32> to vector<16x128xf32>
    %cst = arith.constant 0.000000e+00 : f32
    %cst_0 = arith.constant 0.000000e+00 : f32
    %c0_i32 = arith.constant 0 : i32
    %c16_i32 = arith.constant 16 : i32
    %4 = arith.muli %c0_i32, %c16_i32 : i32
    %5 = arith.sitofp %4 : i32 to f32
    %cst_1 = arith.constant 0.000000e+00 : f32
    %6 = vector.broadcast %cst_1 : f32 to vector<64x16xf32>
    %c0_i32_2 = arith.constant 0 : i32
    %c0 = arith.constant 0 : index
    %7 = arith.index_cast %c0_i32_2 : i32 to index
    %c0_3 = arith.constant 0 : index
    %8 = vector.load %arg2[%c0, %7, %c0_3] : memref<1x1x128xf32, #tpu.memory_space<vmem>>, vector<1x1x128xf32>
    %9 = vector.shape_cast %8 : vector<1x1x128xf32> to vector<1x128xf32>
    %c0_4 = arith.constant 0 : index
    %10 = arith.index_cast %c0_i32_2 : i32 to index
    %c0_5 = arith.constant 0 : index
    %11 = vector.load %arg3[%c0_4, %10, %c0_5] : memref<1x1x128xf32, #tpu.memory_space<vmem>>, vector<1x1x128xf32>
    %12 = vector.shape_cast %11 : vector<1x1x128xf32> to vector<1x128xf32>
    %c0_6 = arith.constant 0 : index
    %13 = arith.index_cast %c0_i32_2 : i32 to index
    %c0_7 = arith.constant 0 : index
    %14 = vector.load %arg4[%c0_6, %13, %c0_7] : memref<1x1x128xf32, #tpu.memory_space<vmem>>, vector<1x1x128xf32>
    %15 = vector.shape_cast %14 : vector<1x1x128xf32> to vector<1x128xf32>
    %c0_8 = arith.constant 0 : index
    %16 = arith.index_cast %c0_i32_2 : i32 to index
    %c0_9 = arith.constant 0 : index
    %17 = vector.load %arg5[%c0_8, %16, %c0_9] : memref<1x1x128xf32, #tpu.memory_space<vmem>>, vector<1x1x128xf32>
    %18 = vector.shape_cast %17 : vector<1x1x128xf32> to vector<1x128xf32>
    %c0_10 = arith.constant 0 : index
    %19 = arith.index_cast %c0_i32_2 : i32 to index
    %c0_11 = arith.constant 0 : index
    %20 = vector.load %arg6[%c0_10, %19, %c0_11] : memref<1x1x128xf32, #tpu.memory_space<vmem>>, vector<1x1x128xf32>
    %21 = vector.shape_cast %20 : vector<1x1x128xf32> to vector<1x128xf32>
    %c0_12 = arith.constant 0 : index
    %c0_13 = arith.constant 0 : index
    %22 = arith.index_cast %c0_i32_2 : i32 to index
    %c0_14 = arith.constant 0 : index
    %23 = vector.load %arg7[%c0_12, %c0_13, %22, %c0_14] : memref<1x1x1x128xf32, #tpu.memory_space<vmem>>, vector<1x1x1x128xf32>
    %24 = vector.shape_cast %23 : vector<1x1x1x128xf32> to vector<1x128xf32>
    %c0_15 = arith.constant 0 : index
    %c0_16 = arith.constant 0 : index
    %25 = arith.index_cast %c0_i32_2 : i32 to index
    %c0_17 = arith.constant 0 : index
    %26 = vector.load %arg8[%c0_15, %c0_16, %25, %c0_17] : memref<1x1x1x128xf32, #tpu.memory_space<vmem>>, vector<1x1x1x128xf32>
    %27 = vector.shape_cast %26 : vector<1x1x1x128xf32> to vector<1x128xf32>
    %cst_18 = arith.constant 2.000000e+00 : f32
    %28 = vector.broadcast %cst_18 : f32 to vector<1x128xf32>
    %29 = arith.subf %28, %9 : vector<1x128xf32>
    %30 = arith.mulf %29, %24 : vector<1x128xf32>
    %cst_19 = arith.constant 1.600000e+01 : f32
    %31 = vector.broadcast %cst_19 : f32 to vector<1x128xf32>
    %32 = arith.mulf %30, %31 : vector<1x128xf32>
    %33 = arith.addf %12, %32 : vector<1x128xf32>
    %34 = arith.mulf %29, %27 : vector<1x128xf32>
    %cst_20 = arith.constant 1.600000e+01 : f32
    %35 = vector.broadcast %cst_20 : f32 to vector<1x128xf32>
    %36 = arith.mulf %34, %35 : vector<1x128xf32>
    %37 = arith.addf %15, %36 : vector<1x128xf32>
    %38 = math.floor %33 : vector<1x128xf32>
    %39 = arith.subf %33, %38 : vector<1x128xf32>
    %40 = math.floor %37 : vector<1x128xf32>
    %41 = arith.subf %37, %40 : vector<1x128xf32>
    %42 = vector.broadcast %5 : f32 to vector<16x128xf32>
    %43 = arith.addf %1, %42 : vector<16x128xf32>
    %44 = vector.broadcast %38 : vector<1x128xf32> to vector<16x128xf32>
    %45 = arith.cmpf oeq, %43, %44 : vector<16x128xf32>
    %cst_21 = arith.constant 1.000000e+00 : f32
    %46 = vector.broadcast %cst_21 : f32 to vector<1x128xf32>
    %47 = arith.subf %46, %39 : vector<1x128xf32>
    %cst_22 = arith.constant 0.000000e+00 : f32
    %48 = vector.shape_cast %47 : vector<1x128xf32> to vector<1x128xf32>
    %49 = vector.broadcast %48 : vector<1x128xf32> to vector<16x128xf32>
    %50 = vector.broadcast %cst_22 : f32 to vector<16x128xf32>
    %51 = arith.select %45, %49, %50 : vector<16x128xi1>, vector<16x128xf32>
    %cst_23 = arith.constant 1.000000e+00 : f32
    %52 = vector.broadcast %cst_23 : f32 to vector<1x128xf32>
    %53 = arith.addf %38, %52 : vector<1x128xf32>
    %54 = vector.broadcast %53 : vector<1x128xf32> to vector<16x128xf32>
    %55 = arith.cmpf oeq, %43, %54 : vector<16x128xf32>
    %cst_24 = arith.constant 0.000000e+00 : f32
    %56 = vector.shape_cast %39 : vector<1x128xf32> to vector<1x128xf32>
    %57 = vector.broadcast %56 : vector<1x128xf32> to vector<16x128xf32>
    %58 = vector.broadcast %cst_24 : f32 to vector<16x128xf32>
    %59 = arith.select %55, %57, %58 : vector<16x128xi1>, vector<16x128xf32>
    %60 = arith.addf %51, %59 : vector<16x128xf32>
    %61 = vector.broadcast %18 : vector<1x128xf32> to vector<16x128xf32>
    %62 = arith.mulf %61, %60 : vector<16x128xf32>
    %63 = vector.broadcast %21 : vector<1x128xf32> to vector<16x128xf32>
    %64 = arith.mulf %63, %60 : vector<16x128xf32>
    %65 = arith.mulf %9, %18 : vector<1x128xf32>
    %66 = vector.broadcast %65 : vector<1x128xf32> to vector<16x128xf32>
    %67 = arith.mulf %66, %60 : vector<16x128xf32>
    %68 = arith.mulf %9, %21 : vector<1x128xf32>
    %69 = vector.broadcast %68 : vector<1x128xf32> to vector<16x128xf32>
    %70 = arith.mulf %69, %60 : vector<16x128xf32>
    %71 = tpu.concatenate %62, %64, %67, %70 in 0 : vector<16x128xf32>, vector<16x128xf32>, vector<16x128xf32>, vector<16x128xf32> -> vector<64x128xf32>
    %72 = arith.truncf %71 : vector<64x128xf32> to vector<64x128xbf16>
    %73 = vector.broadcast %40 : vector<1x128xf32> to vector<16x128xf32>
    %74 = arith.cmpf oeq, %3, %73 : vector<16x128xf32>
    %cst_25 = arith.constant 1.000000e+00 : f32
    %75 = vector.broadcast %cst_25 : f32 to vector<1x128xf32>
    %76 = arith.subf %75, %41 : vector<1x128xf32>
    %cst_26 = arith.constant 0.000000e+00 : f32
    %77 = vector.shape_cast %76 : vector<1x128xf32> to vector<1x128xf32>
    %78 = vector.broadcast %77 : vector<1x128xf32> to vector<16x128xf32>
    %79 = vector.broadcast %cst_26 : f32 to vector<16x128xf32>
    %80 = arith.select %74, %78, %79 : vector<16x128xi1>, vector<16x128xf32>
    %cst_27 = arith.constant 1.000000e+00 : f32
    %81 = vector.broadcast %cst_27 : f32 to vector<1x128xf32>
    %82 = arith.addf %40, %81 : vector<1x128xf32>
    %83 = vector.broadcast %82 : vector<1x128xf32> to vector<16x128xf32>
    %84 = arith.cmpf oeq, %3, %83 : vector<16x128xf32>
    %cst_28 = arith.constant 0.000000e+00 : f32
    %85 = vector.shape_cast %41 : vector<1x128xf32> to vector<1x128xf32>
    %86 = vector.broadcast %85 : vector<1x128xf32> to vector<16x128xf32>
    %87 = vector.broadcast %cst_28 : f32 to vector<16x128xf32>
    %88 = arith.select %84, %86, %87 : vector<16x128xi1>, vector<16x128xf32>
    %89 = arith.addf %80, %88 : vector<16x128xf32>
    %90 = arith.truncf %89 : vector<16x128xf32> to vector<16x128xbf16>
    %cst_29 = arith.constant dense<0.000000e+00> : vector<64x16xf32>
    %91 = tpu.matmul %72, %90, %cst_29 {dimension_numbers = #tpu.dot_dimension_numbers<[1], [1], [0], [0], [0, 0, 1, 0], [], []>} : vector<64x128xbf16>, vector<16x128xbf16>, vector<64x16xf32> -> vector<64x16xf32>
    %92 = arith.addf %6, %91 : vector<64x16xf32>
    %c1_i32 = arith.constant 1 : i32
    %93 = vector.extract_strided_slice %92 {offsets = [0, 0], sizes = [16, 16], strides = [1, 1]} : vector<64x16xf32> to vector<16x16xf32>
    %94 = vector.extract_strided_slice %92 {offsets = [16, 0], sizes = [16, 16], strides = [1, 1]} : vector<64x16xf32> to vector<16x16xf32>
    %95 = vector.extract_strided_slice %92 {offsets = [32, 0], sizes = [16, 16], strides = [1, 1]} : vector<64x16xf32> to vector<16x16xf32>
    %96 = vector.extract_strided_slice %92 {offsets = [48, 0], sizes = [16, 16], strides = [1, 1]} : vector<64x16xf32> to vector<16x16xf32>
    %cst_30 = arith.constant 9.99999971E-10 : f32
    %97 = vector.broadcast %cst_30 : f32 to vector<16x16xf32>
    %98 = arith.addf %93, %97 : vector<16x16xf32>
    %99 = tpu.reciprocal %98 {approx = true} : vector<16x16xf32> -> vector<16x16xf32>
    %100 = arith.mulf %95, %99 : vector<16x16xf32>
    %cst_31 = arith.constant 5.000000e-01 : f32
    %101 = vector.broadcast %cst_31 : f32 to vector<16x16xf32>
    %102 = arith.mulf %100, %101 : vector<16x16xf32>
    %cst_32 = arith.constant 9.99999971E-10 : f32
    %103 = vector.broadcast %cst_32 : f32 to vector<16x16xf32>
    %104 = arith.addf %94, %103 : vector<16x16xf32>
    %105 = tpu.reciprocal %104 {approx = true} : vector<16x16xf32> -> vector<16x16xf32>
    %106 = arith.mulf %96, %105 : vector<16x16xf32>
    %cst_33 = arith.constant 5.000000e-01 : f32
    %107 = vector.broadcast %cst_33 : f32 to vector<16x16xf32>
    %108 = arith.mulf %106, %107 : vector<16x16xf32>
    %109 = arith.addf %93, %94 : vector<16x16xf32>
    %cst_34 = arith.constant 0.000000e+00 : f32
    %110 = vector.broadcast %cst_34 : f32 to vector<16x16xf32>
    %111 = arith.cmpf ogt, %109, %110 : vector<16x16xf32>
    %112 = arith.extui %111 : vector<16x16xi1> to vector<16x16xi32>
    %113 = arith.sitofp %112 : vector<16x16xi32> to vector<16x16xf32>
    %114 = arith.mulf %102, %102 : vector<16x16xf32>
    %115 = vector.shape_cast %114 : vector<16x16xf32> to vector<1x16x16xf32>
    %cst_35 = arith.constant dense<0.000000e+00> : vector<1xf32>
    %116 = vector.multi_reduction <add>, %115, %cst_35 [1, 2] : vector<1x16x16xf32> to vector<1xf32>
    %117 = vector.shape_cast %116 : vector<1xf32> to vector<1x1x1xf32>
    %118 = vector.extract %117[0, 0, 0] : f32 from vector<1x1x1xf32>
    %119 = arith.addf %cst, %118 : f32
    %120 = arith.mulf %108, %108 : vector<16x16xf32>
    %121 = vector.shape_cast %120 : vector<16x16xf32> to vector<1x16x16xf32>
    %cst_36 = arith.constant dense<0.000000e+00> : vector<1xf32>
    %122 = vector.multi_reduction <add>, %121, %cst_36 [1, 2] : vector<1x16x16xf32> to vector<1xf32>
    %123 = vector.shape_cast %122 : vector<1xf32> to vector<1x1x1xf32>
    %124 = vector.extract %123[0, 0, 0] : f32 from vector<1x1x1xf32>
    %125 = arith.addf %119, %124 : f32
    %126 = vector.shape_cast %113 : vector<16x16xf32> to vector<1x16x16xf32>
    %cst_37 = arith.constant dense<0.000000e+00> : vector<1xf32>
    %127 = vector.multi_reduction <add>, %126, %cst_37 [1, 2] : vector<1x16x16xf32> to vector<1xf32>
    %128 = vector.shape_cast %127 : vector<1xf32> to vector<1x1x1xf32>
    %129 = vector.extract %128[0, 0, 0] : f32 from vector<1x1x1xf32>
    %130 = arith.addf %cst_0, %129 : f32
    %c1_i32_38 = arith.constant 1 : i32
    %cst_39 = arith.constant 1.000000e+00 : f32
    %131 = arith.maximumf %130, %cst_39 : f32
    %132 = arith.divf %125, %131 : f32
    %cst_40 = arith.constant 0.000000e+00 : f32
    %cst_41 = arith.constant 0.000000e+00 : f32
    %c0_i32_42 = arith.constant 0 : i32
    %c16_i32_43 = arith.constant 16 : i32
    %133 = arith.muli %c0_i32_42, %c16_i32_43 : i32
    %134 = arith.sitofp %133 : i32 to f32
    %cst_44 = arith.constant 0.000000e+00 : f32
    %135 = vector.broadcast %cst_44 : f32 to vector<64x16xf32>
    %c0_i32_45 = arith.constant 0 : i32
    %c0_46 = arith.constant 0 : index
    %136 = arith.index_cast %c0_i32_45 : i32 to index
    %c0_47 = arith.constant 0 : index
    %137 = vector.load %arg2[%c0_46, %136, %c0_47] : memref<1x1x128xf32, #tpu.memory_space<vmem>>, vector<1x1x128xf32>
    %138 = vector.shape_cast %137 : vector<1x1x128xf32> to vector<1x128xf32>
    %c0_48 = arith.constant 0 : index
    %139 = arith.index_cast %c0_i32_45 : i32 to index
    %c0_49 = arith.constant 0 : index
    %140 = vector.load %arg3[%c0_48, %139, %c0_49] : memref<1x1x128xf32, #tpu.memory_space<vmem>>, vector<1x1x128xf32>
    %141 = vector.shape_cast %140 : vector<1x1x128xf32> to vector<1x128xf32>
    %c0_50 = arith.constant 0 : index
    %142 = arith.index_cast %c0_i32_45 : i32 to index
    %c0_51 = arith.constant 0 : index
    %143 = vector.load %arg4[%c0_50, %142, %c0_51] : memref<1x1x128xf32, #tpu.memory_space<vmem>>, vector<1x1x128xf32>
    %144 = vector.shape_cast %143 : vector<1x1x128xf32> to vector<1x128xf32>
    %c0_52 = arith.constant 0 : index
    %145 = arith.index_cast %c0_i32_45 : i32 to index
    %c0_53 = arith.constant 0 : index
    %146 = vector.load %arg5[%c0_52, %145, %c0_53] : memref<1x1x128xf32, #tpu.memory_space<vmem>>, vector<1x1x128xf32>
    %147 = vector.shape_cast %146 : vector<1x1x128xf32> to vector<1x128xf32>
    %c0_54 = arith.constant 0 : index
    %148 = arith.index_cast %c0_i32_45 : i32 to index
    %c0_55 = arith.constant 0 : index
    %149 = vector.load %arg6[%c0_54, %148, %c0_55] : memref<1x1x128xf32, #tpu.memory_space<vmem>>, vector<1x1x128xf32>
    %150 = vector.shape_cast %149 : vector<1x1x128xf32> to vector<1x128xf32>
    %c0_56 = arith.constant 0 : index
    %c0_57 = arith.constant 0 : index
    %151 = arith.index_cast %c0_i32_45 : i32 to index
    %c0_58 = arith.constant 0 : index
    %152 = vector.load %arg7[%c0_56, %c0_57, %151, %c0_58] : memref<1x1x1x128xf32, #tpu.memory_space<vmem>>, vector<1x1x1x128xf32>
    %153 = vector.shape_cast %152 : vector<1x1x1x128xf32> to vector<1x128xf32>
    %c0_59 = arith.constant 0 : index
    %c0_60 = arith.constant 0 : index
    %154 = arith.index_cast %c0_i32_45 : i32 to index
    %c0_61 = arith.constant 0 : index
    %155 = vector.load %arg8[%c0_59, %c0_60, %154, %c0_61] : memref<1x1x1x128xf32, #tpu.memory_space<vmem>>, vector<1x1x1x128xf32>
    %156 = vector.shape_cast %155 : vector<1x1x1x128xf32> to vector<1x128xf32>
    %cst_62 = arith.constant 0.000000e+00 : f32
    %157 = vector.broadcast %cst_62 : f32 to vector<1x128xf32>
    %158 = arith.subf %157, %138 : vector<1x128xf32>
    %159 = arith.mulf %158, %153 : vector<1x128xf32>
    %cst_63 = arith.constant 1.600000e+01 : f32
    %160 = vector.broadcast %cst_63 : f32 to vector<1x128xf32>
    %161 = arith.mulf %159, %160 : vector<1x128xf32>
    %162 = arith.addf %141, %161 : vector<1x128xf32>
    %163 = arith.mulf %158, %156 : vector<1x128xf32>
    %cst_64 = arith.constant 1.600000e+01 : f32
    %164 = vector.broadcast %cst_64 : f32 to vector<1x128xf32>
    %165 = arith.mulf %163, %164 : vector<1x128xf32>
    %166 = arith.addf %144, %165 : vector<1x128xf32>
    %167 = math.floor %162 : vector<1x128xf32>
    %168 = arith.subf %162, %167 : vector<1x128xf32>
    %169 = math.floor %166 : vector<1x128xf32>
    %170 = arith.subf %166, %169 : vector<1x128xf32>
    %cst_65 = arith.constant 2.000000e+00 : f32
    %171 = vector.broadcast %cst_65 : f32 to vector<1x128xf32>
    %172 = arith.subf %171, %138 : vector<1x128xf32>
    %173 = vector.broadcast %134 : f32 to vector<16x128xf32>
    %174 = arith.addf %1, %173 : vector<16x128xf32>
    %175 = vector.broadcast %167 : vector<1x128xf32> to vector<16x128xf32>
    %176 = arith.cmpf oeq, %174, %175 : vector<16x128xf32>
    %cst_66 = arith.constant 1.000000e+00 : f32
    %177 = vector.broadcast %cst_66 : f32 to vector<1x128xf32>
    %178 = arith.subf %177, %168 : vector<1x128xf32>
    %cst_67 = arith.constant 0.000000e+00 : f32
    %179 = vector.shape_cast %178 : vector<1x128xf32> to vector<1x128xf32>
    %180 = vector.broadcast %179 : vector<1x128xf32> to vector<16x128xf32>
    %181 = vector.broadcast %cst_67 : f32 to vector<16x128xf32>
    %182 = arith.select %176, %180, %181 : vector<16x128xi1>, vector<16x128xf32>
    %cst_68 = arith.constant 1.000000e+00 : f32
    %183 = vector.broadcast %cst_68 : f32 to vector<1x128xf32>
    %184 = arith.addf %167, %183 : vector<1x128xf32>
    %185 = vector.broadcast %184 : vector<1x128xf32> to vector<16x128xf32>
    %186 = arith.cmpf oeq, %174, %185 : vector<16x128xf32>
    %cst_69 = arith.constant 0.000000e+00 : f32
    %187 = vector.shape_cast %168 : vector<1x128xf32> to vector<1x128xf32>
    %188 = vector.broadcast %187 : vector<1x128xf32> to vector<16x128xf32>
    %189 = vector.broadcast %cst_69 : f32 to vector<16x128xf32>
    %190 = arith.select %186, %188, %189 : vector<16x128xi1>, vector<16x128xf32>
    %191 = arith.addf %182, %190 : vector<16x128xf32>
    %192 = vector.broadcast %147 : vector<1x128xf32> to vector<16x128xf32>
    %193 = arith.mulf %192, %191 : vector<16x128xf32>
    %194 = vector.broadcast %150 : vector<1x128xf32> to vector<16x128xf32>
    %195 = arith.mulf %194, %191 : vector<16x128xf32>
    %196 = arith.mulf %172, %147 : vector<1x128xf32>
    %197 = vector.broadcast %196 : vector<1x128xf32> to vector<16x128xf32>
    %198 = arith.mulf %197, %191 : vector<16x128xf32>
    %199 = arith.mulf %172, %150 : vector<1x128xf32>
    %200 = vector.broadcast %199 : vector<1x128xf32> to vector<16x128xf32>
    %201 = arith.mulf %200, %191 : vector<16x128xf32>
    %202 = tpu.concatenate %193, %195, %198, %201 in 0 : vector<16x128xf32>, vector<16x128xf32>, vector<16x128xf32>, vector<16x128xf32> -> vector<64x128xf32>
    %203 = arith.truncf %202 : vector<64x128xf32> to vector<64x128xbf16>
    %204 = vector.broadcast %169 : vector<1x128xf32> to vector<16x128xf32>
    %205 = arith.cmpf oeq, %3, %204 : vector<16x128xf32>
    %cst_70 = arith.constant 1.000000e+00 : f32
    %206 = vector.broadcast %cst_70 : f32 to vector<1x128xf32>
    %207 = arith.subf %206, %170 : vector<1x128xf32>
    %cst_71 = arith.constant 0.000000e+00 : f32
    %208 = vector.shape_cast %207 : vector<1x128xf32> to vector<1x128xf32>
    %209 = vector.broadcast %208 : vector<1x128xf32> to vector<16x128xf32>
    %210 = vector.broadcast %cst_71 : f32 to vector<16x128xf32>
    %211 = arith.select %205, %209, %210 : vector<16x128xi1>, vector<16x128xf32>
    %cst_72 = arith.constant 1.000000e+00 : f32
    %212 = vector.broadcast %cst_72 : f32 to vector<1x128xf32>
    %213 = arith.addf %169, %212 : vector<1x128xf32>
    %214 = vector.broadcast %213 : vector<1x128xf32> to vector<16x128xf32>
    %215 = arith.cmpf oeq, %3, %214 : vector<16x128xf32>
    %cst_73 = arith.constant 0.000000e+00 : f32
    %216 = vector.shape_cast %170 : vector<1x128xf32> to vector<1x128xf32>
    %217 = vector.broadcast %216 : vector<1x128xf32> to vector<16x128xf32>
    %218 = vector.broadcast %cst_73 : f32 to vector<16x128xf32>
    %219 = arith.select %215, %217, %218 : vector<16x128xi1>, vector<16x128xf32>
    %220 = arith.addf %211, %219 : vector<16x128xf32>
    %221 = arith.truncf %220 : vector<16x128xf32> to vector<16x128xbf16>
    %cst_74 = arith.constant dense<0.000000e+00> : vector<64x16xf32>
    %222 = tpu.matmul %203, %221, %cst_74 {dimension_numbers = #tpu.dot_dimension_numbers<[1], [1], [0], [0], [0, 0, 1, 0], [], []>} : vector<64x128xbf16>, vector<16x128xbf16>, vector<64x16xf32> -> vector<64x16xf32>
    %223 = arith.addf %135, %222 : vector<64x16xf32>
    %c1_i32_75 = arith.constant 1 : i32
    %224 = vector.extract_strided_slice %223 {offsets = [0, 0], sizes = [16, 16], strides = [1, 1]} : vector<64x16xf32> to vector<16x16xf32>
    %225 = vector.extract_strided_slice %223 {offsets = [16, 0], sizes = [16, 16], strides = [1, 1]} : vector<64x16xf32> to vector<16x16xf32>
    %226 = vector.extract_strided_slice %223 {offsets = [32, 0], sizes = [16, 16], strides = [1, 1]} : vector<64x16xf32> to vector<16x16xf32>
    %227 = vector.extract_strided_slice %223 {offsets = [48, 0], sizes = [16, 16], strides = [1, 1]} : vector<64x16xf32> to vector<16x16xf32>
    %cst_76 = arith.constant 9.99999971E-10 : f32
    %228 = vector.broadcast %cst_76 : f32 to vector<16x16xf32>
    %229 = arith.addf %224, %228 : vector<16x16xf32>
    %230 = tpu.reciprocal %229 {approx = true} : vector<16x16xf32> -> vector<16x16xf32>
    %231 = arith.mulf %226, %230 : vector<16x16xf32>
    %cst_77 = arith.constant 5.000000e-01 : f32
    %232 = vector.broadcast %cst_77 : f32 to vector<16x16xf32>
    %233 = arith.mulf %231, %232 : vector<16x16xf32>
    %cst_78 = arith.constant 9.99999971E-10 : f32
    %234 = vector.broadcast %cst_78 : f32 to vector<16x16xf32>
    %235 = arith.addf %225, %234 : vector<16x16xf32>
    %236 = tpu.reciprocal %235 {approx = true} : vector<16x16xf32> -> vector<16x16xf32>
    %237 = arith.mulf %227, %236 : vector<16x16xf32>
    %cst_79 = arith.constant 5.000000e-01 : f32
    %238 = vector.broadcast %cst_79 : f32 to vector<16x16xf32>
    %239 = arith.mulf %237, %238 : vector<16x16xf32>
    %240 = arith.addf %224, %225 : vector<16x16xf32>
    %cst_80 = arith.constant 0.000000e+00 : f32
    %241 = vector.broadcast %cst_80 : f32 to vector<16x16xf32>
    %242 = arith.cmpf ogt, %240, %241 : vector<16x16xf32>
    %243 = arith.extui %242 : vector<16x16xi1> to vector<16x16xi32>
    %244 = arith.sitofp %243 : vector<16x16xi32> to vector<16x16xf32>
    %245 = arith.mulf %233, %233 : vector<16x16xf32>
    %246 = vector.shape_cast %245 : vector<16x16xf32> to vector<1x16x16xf32>
    %cst_81 = arith.constant dense<0.000000e+00> : vector<1xf32>
    %247 = vector.multi_reduction <add>, %246, %cst_81 [1, 2] : vector<1x16x16xf32> to vector<1xf32>
    %248 = vector.shape_cast %247 : vector<1xf32> to vector<1x1x1xf32>
    %249 = vector.extract %248[0, 0, 0] : f32 from vector<1x1x1xf32>
    %250 = arith.addf %cst_40, %249 : f32
    %251 = arith.mulf %239, %239 : vector<16x16xf32>
    %252 = vector.shape_cast %251 : vector<16x16xf32> to vector<1x16x16xf32>
    %cst_82 = arith.constant dense<0.000000e+00> : vector<1xf32>
    %253 = vector.multi_reduction <add>, %252, %cst_82 [1, 2] : vector<1x16x16xf32> to vector<1xf32>
    %254 = vector.shape_cast %253 : vector<1xf32> to vector<1x1x1xf32>
    %255 = vector.extract %254[0, 0, 0] : f32 from vector<1x1x1xf32>
    %256 = arith.addf %250, %255 : f32
    %257 = vector.shape_cast %244 : vector<16x16xf32> to vector<1x16x16xf32>
    %cst_83 = arith.constant dense<0.000000e+00> : vector<1xf32>
    %258 = vector.multi_reduction <add>, %257, %cst_83 [1, 2] : vector<1x16x16xf32> to vector<1xf32>
    %259 = vector.shape_cast %258 : vector<1xf32> to vector<1x1x1xf32>
    %260 = vector.extract %259[0, 0, 0] : f32 from vector<1x1x1xf32>
    %261 = arith.addf %cst_41, %260 : f32
    %c1_i32_84 = arith.constant 1 : i32
    %cst_85 = arith.constant 1.000000e+00 : f32
    %262 = arith.maximumf %261, %cst_85 : f32
    %263 = arith.divf %256, %262 : f32
    %264 = arith.addf %132, %263 : f32
    %265 = vector.broadcast %264 : f32 to vector<1x1x1x128xf32>
    %c0_86 = arith.constant 0 : index
    %c0_87 = arith.constant 0 : index
    %c0_88 = arith.constant 0 : index
    %c0_89 = arith.constant 0 : index
    %266 = vector.load %arg9[%c0_86, %c0_87, %c0_88, %c0_89] : memref<1x1x1x128xf32, #tpu.memory_space<vmem>>, vector<1x1x1x128xf32>
    tpu.vector_store %arg9[%c0_86, %c0_87, %c0_88, %c0_89], %265 {strides = array<i32>} : memref<1x1x1x128xf32, #tpu.memory_space<vmem>>, vector<1x1x1x128xf32>,
    return
  }
  func.func @transform_0(%arg0: i32, %arg1: i32) -> (i32, i32, i32) {
    %c0_i32 = arith.constant 0 : i32
    %c0_i32_0 = arith.constant 0 : i32
    %c0_i32_1 = arith.constant 0 : i32
    return %arg0, %c0_i32, %c0_i32_0 : i32, i32, i32
  }
  func.func @transform_1(%arg0: i32, %arg1: i32) -> (i32, i32, i32) {
    %c0_i32 = arith.constant 0 : i32
    %c0_i32_0 = arith.constant 0 : i32
    %c0_i32_1 = arith.constant 0 : i32
    return %arg0, %c0_i32, %c0_i32_0 : i32, i32, i32
  }
  func.func @transform_2(%arg0: i32, %arg1: i32) -> (i32, i32, i32) {
    %c0_i32 = arith.constant 0 : i32
    %c0_i32_0 = arith.constant 0 : i32
    %c0_i32_1 = arith.constant 0 : i32
    return %arg0, %c0_i32, %c0_i32_0 : i32, i32, i32
  }
  func.func @transform_3(%arg0: i32, %arg1: i32) -> (i32, i32, i32) {
    %c0_i32 = arith.constant 0 : i32
    %c0_i32_0 = arith.constant 0 : i32
    %c0_i32_1 = arith.constant 0 : i32
    return %arg0, %c0_i32, %c0_i32_0 : i32, i32, i32
  }
  func.func @transform_4(%arg0: i32, %arg1: i32) -> (i32, i32, i32) {
    %c0_i32 = arith.constant 0 : i32
    %c0_i32_0 = arith.constant 0 : i32
    %c0_i32_1 = arith.constant 0 : i32
    return %arg0, %c0_i32, %c0_i32_0 : i32, i32, i32
  }
  func.func @transform_5(%arg0: i32, %arg1: i32) -> (i32, i32, i32, i32) {
    %c0_i32 = arith.constant 0 : i32
    %c0_i32_0 = arith.constant 0 : i32
    %c0_i32_1 = arith.constant 0 : i32
    return %arg1, %arg0, %c0_i32, %c0_i32_0 : i32, i32, i32, i32
  }
  func.func @transform_6(%arg0: i32, %arg1: i32) -> (i32, i32, i32, i32) {
    %c0_i32 = arith.constant 0 : i32
    %c0_i32_0 = arith.constant 0 : i32
    %c0_i32_1 = arith.constant 0 : i32
    return %arg1, %arg0, %c0_i32, %c0_i32_0 : i32, i32, i32, i32
  }
  func.func @transform_7(%arg0: i32, %arg1: i32) -> (i32, i32, i32, i32) {
    %c0_i32 = arith.constant 0 : i32
    %c0_i32_0 = arith.constant 0 : i32
    %c0_i32_1 = arith.constant 0 : i32
    return %arg1, %arg0, %c0_i32, %c0_i32_0 : i32, i32, i32, i32
  }
}

</mosaic_0001>

<bundles_post_ra>
// kernel: tpu_custom_call.1
= control target key start
LH: loop header
LB: loop body
LE: loop exit
PB: predicated region body
PF: predicated region fallthrough
CT: control target
= control target key end

     0   :  { %s2437_s0 = inlined_call_operand.hbm [shape: f32[2,1,128], index: 0, kind: input, shape index: {}]   ;;  %s2438_s1 = inlined_call_operand.hbm [shape: f32[2,1,128], index: 1, kind: input, shape index: {}]   ;;  %s2439_s2 = inlined_call_operand.hbm [shape: f32[2,1,128], index: 2, kind: input, shape index: {}]   ;;  %s2440_s3 = inlined_call_operand.hbm [shape: f32[2,1,128], index: 3, kind: input, shape index: {}]   ;;  %s2441_s4 = inlined_call_operand.hbm [shape: f32[2,1,128], index: 4, kind: input, shape index: {}]   ;;  %s2442_s5 = inlined_call_operand.hbm [shape: f32[2,2,1,128], index: 5, kind: input, shape index: {}]   ;;  %s2443_s6 = inlined_call_operand.hbm [shape: f32[2,2,1,128], index: 6, kind: input, shape index: {}]   ;;  %s2444_s7 = inlined_call_operand.hbm [shape: f32[2,2,1,128], index: 7, kind: output, shape index: {}]  }
   0x1   :  { %2468 = sst [smem:[#allocation32_spill]] %s2437_s0 }
   0x2   :  { %2469 = sst [smem:[#allocation33_spill]] %s2438_s1 }
   0x3   :  { %2470 = sst [smem:[#allocation34_spill]] %s2439_s2 }
   0x4   :  { %2471 = sst [smem:[#allocation35_spill]] %s2440_s3 }
   0x5   :  { %2472 = sst [smem:[#allocation36_spill]] %s2441_s4 }
   0x6   :  { %2473 = sst [smem:[#allocation37_spill]] %s2442_s5 }
   0x7   :  { %2474 = sst [smem:[#allocation38_spill]] %s2444_s7 }
   0x8   :  { %12 = vsyncpa [#allocation3], 0 }
   0x9   :  { %14 = vsyncpa [#allocation3 + $0x1], 0 }
   0xa   :  { %15 = vsyncpa [#allocation6], 0 }
   0xb   :  { %17 = vsyncpa [#allocation6 + $0x1], 0 }
   0xc   :  { %18 = vsyncpa [#allocation9], 0 }
   0xd   :  { %20 = vsyncpa [#allocation9 + $0x1], 0 }
   0xe   :  { %21 = vsyncpa [#allocation12], 0 }
   0xf   :  { %23 = vsyncpa [#allocation12 + $0x1], 0 }
  0x10   :  { %24 = vsyncpa [#allocation4], 0 }
  0x11   :  { %26 = vsyncpa [#allocation4 + $0x1], 0  ;;  %s1856_s24 = smov 0   ;;  %s1858_s25 = smov 0  }
  0x12   :  { %s1860_s26 = smov 0   ;;  %s1862_s27 = smov 0  }
  0x13   :  { %s1864_s28 = smov 0   ;;  %s1866_s29 = smov 0  }
  0x14   :  { %s1868_s30 = smov 0   ;;  %s1870_s8 = smov 0  }
  0x15   :  { %s1872_s9 = smov 0   ;;  %s1874_s10 = smov 0  }
  0x16   :  { %s1876_s11 = smov 0  }
  0x17 LB: > { %2475 = sst [smem:[#allocation20_spill]] %s1764_s24  ;;  %p58_p0 = scmp.ne.s32.totalorder %s1784_s29, %s1780_s28  ;;  %s1804_s11 = sphi %s1876_s11, %s32_s11   ;;  %s1800_s10 = sphi %s1874_s10, %s2535_s10   ;;  %s1796_s9 = sphi %s1872_s9, %s2534_s9   ;;  %s1792_s8 = sphi %s1870_s8, %s2533_s8   ;;  %s1788_s30 = sphi %s1868_s30, %s2532_s30   ;;  %s1784_s29 = sphi %s1866_s29, %s2531_s29   ;;  %s1780_s28 = sphi %s1864_s28, %s2539_s28   ;;  %s1776_s27 = sphi %s1862_s27, %s2538_s27   ;;  %s1772_s26 = sphi %s1860_s26, %s2537_s26   ;;  %s1768_s25 = sphi %s1858_s25, %s2536_s25   ;;  %s1764_s24 = sphi %s1856_s24, %s2529_s24  }
  0x18   : > { %2476 = sst [smem:[#allocation21_spill]] %s1768_s25  ;;  %p2447_p1 = scmp.eq.s32.totalorder %s1804_s11, 0 }
  0x19   : > { %2477 = sst [smem:[#allocation22_spill]] %s1784_s29  ;;  %p2446_p2 = scmp.lt.s32.totalorder %s1804_s11, 4 }
  0x1a   : > { %2478 = sst [smem:[#allocation23_spill]] %s1788_s30  ;;  %p60_p3 = por %p2447_p1, %p58_p0 }
  0x1b   : > { %2479 = sst [smem:[#allocation24_spill]] %s1792_s8  ;;  %s1918_s12 = sand.u32 1, %s1784_s29  }
  0x1c   : > { %2480 = sst [smem:[#allocation25_spill]] %s1796_s9  ;;  %s1921_s13 = sshll.u32 %s1800_s10, 4 }
  0x1d   : > { %2481 = sst [smem:[#allocation26_spill]] %s1800_s10  ;;  %s1924_s14 = sand.u32 1, %s1804_s11  }
  0x1e   : > { %p1928_p4 = pnand %p2446_p2, %p60_p3  ;;  %s2483_s1 = sld [smem:[#allocation33_spill]] }
  0x1f   : > { %s296_s19 = scalar_lea.vmem [#allocation5], %s1918_s12 }
  0x20   : > { %s2482_s15 = scalar_select %p1928_p4, 1, 0 }
  0x21   : > { %s303_s20 = sshll.u32 %s296_s19, 4  ;;  %p1947_p7 = pneg %p1928_p4  ;;  %s1939_s20 = int_to_ptr.vmem [resolvable:$true] %s303_s20 }
  0x24   : > { %s1936_s18 = scalar_lea.hbm %s2483_s1, %s1921_s13  ;;  %s1465_s7 = scalar_lea.hbm %s2483_s1, 32 }
  0x25   : > { %s1460_s22 = scalar_lea.hbm %s1936_s18, 16  ;;  %p1466_p10 = scmp.lt.u32.totalorder %s1936_s18, %s2483_s1 }
  0x26   : > { %p1461_p6 = scmp.ne.s32.totalorder %s1936_s18, %s1460_s22  ;;  %p1467_p11 = scmp.lt.u32.totalorder %s1465_s7, %s1460_s22 }
  0x27   : > { %p1469_p13 = scmp.lt.u32.totalorder %s1460_s22, %s1936_s18 }
  0x28   : > { %p1463_p8 = pnand %p1947_p7, %p1461_p6  ;;  %p1468_p12 = por %p1467_p11, %p1466_p10 }
  0x2a   : > { %p1464_p9 = pneg %p1463_p8  ;;  %p1470_p0 = por %p1469_p13, %p1468_p12 }
  0x2c   : > { %p1471_p3 = pnand %p1470_p0, %p1464_p9 }
  0x2e   : > { %1474 = shalt.err (!%p1471_p3)
}
  0x2f   : > { %s1475_s21 = scalar_lea.vmem %s1939_s20, 16  ;;  %s1806_s16 = smov [#allocation5]  }
  0x30   : > { %p1476_p6 = scmp.ne.s32.totalorder %s1939_s20, %s1475_s21  ;;  %s1480_s17 = sshll.u32 %s1806_s16, 4  ;;  %s1481_s17 = int_to_ptr.vmem [resolvable:$false] %s1480_s17 }
  0x31   : > { %s1482_s8 = scalar_lea.vmem %s1481_s17, 32  ;;  %p1483_p1 = scmp.lt.s32.totalorder %s1939_s20, %s1481_s17 }
  0x32   : > { %p1478_p8 = pnand %p1476_p6, %p1947_p7  ;;  %p1484_p5 = scmp.lt.s32.totalorder %s1482_s8, %s1475_s21 }
  0x34   : > { %p1479_p2 = pneg %p1478_p8  ;;  %p1485_p10 = por %p1484_p5, %p1483_p1 }
  0x36   : > { %p1486_p11 = pnand %p1485_p10, %p1479_p2 }
  0x38   : > { %1489 = shalt.err (!%p1486_p11)
}
  0x39   : > { %s2485_s7 = scalar_lea.sflag [#allocation6], %s1924_s14  ;;  %p397_p9 = scmp.lt.s32.totalorder %s1804_s11, 5 }
  0x3a   : > { %1328 = dma.hbm_to_vmem [thread:$0]  (!%p1928_p4), %s1936_s18, 16, %s1939_s20, %s2485_s7  }
  0x3b   : > { %s2486_s3 = sld [smem:[#allocation35_spill]]  ;;  %p2487_p1 = scmp.ge.s32.totalorder %s1804_s11, 1 }
  0x3c   : > { %s330_s17 = scalar_lea.vmem [#allocation8], %s1918_s12 }
  0x3d   : > { %p1981_p2 = pnand %p2487_p1, %p397_p9  ;;  %s337_s8 = sshll.u32 %s330_s17, 4  ;;  %s338_s8 = int_to_ptr.vmem [resolvable:$true] %s337_s8 }
  0x3f   : > { %s2488_s16 = scalar_select %p1981_p2, 1, 0 }
  0x41   : > { %s1977_s21 = scalar_lea.hbm %s2486_s3, %s1921_s13  ;;  %2489 = sst [smem:[#allocation27_spill]] %s2488_s16 }
  0x42   : > { %s1490_s18 = scalar_lea.hbm %s1977_s21, 16  ;;  %s1495_s22 = scalar_lea.hbm %s2486_s3, 32 }
  0x43   : > { %p1491_p5 = scmp.ne.s32.totalorder %s1977_s21, %s1490_s18  ;;  %p1496_p0 = scmp.lt.u32.totalorder %s1977_s21, %s2486_s3 }
  0x44   : > { %p1497_p3 = scmp.lt.u32.totalorder %s1495_s22, %s1490_s18  ;;  %p1499_p8 = scmp.lt.u32.totalorder %s1490_s18, %s1977_s21 }
  0x45   : > { %p1493_p12 = pnand %p1491_p5, %p1947_p7 }
  0x46   : > { %p1498_p6 = por %p1497_p3, %p1496_p0 }
  0x47   : > { %p1494_p13 = pneg %p1493_p12 }
  0x48   : > { %p1500_p10 = por %p1499_p8, %p1498_p6 }
  0x4a   : > { %p1501_p11 = pnand %p1500_p10, %p1494_p13 }
  0x4c   : > { %1504 = shalt.err (!%p1501_p11)
}
  0x4d   : > { %s1505_s17 = scalar_lea.vmem %s338_s8, 16  ;;  %s1807_s1 = smov [#allocation8]  }
  0x4e   : > { %p1506_p9 = scmp.ne.s32.totalorder %s338_s8, %s1505_s17  ;;  %s1510_s16 = sshll.u32 %s1807_s1, 4  ;;  %s1511_s16 = int_to_ptr.vmem [resolvable:$false] %s1510_s16 }
  0x4f   : > { %s1512_s20 = scalar_lea.vmem %s1511_s16, 32  ;;  %p1513_p12 = scmp.lt.s32.totalorder %s338_s8, %s1511_s16 }
  0x50   : > { %p1508_p1 = pnand %p1506_p9, %p1947_p7  ;;  %p1514_p2 = scmp.lt.s32.totalorder %s1512_s20, %s1505_s17 }
  0x52   : > { %p1509_p5 = pneg %p1508_p1  ;;  %p1515_p4 = por %p1514_p2, %p1513_p12 }
  0x54   : > { %p1516_p0 = pnand %p1515_p4, %p1509_p5 }
  0x56   : > { %1519 = shalt.err (!%p1516_p0)
}
  0x57   : > { %p2490_p3 = scmp.ne.s32.totalorder %s2482_s15, 0  ;;  %s2491_s30 = scalar_lea.sflag [#allocation9], %s1924_s14 }
  0x58   : > { %s2007_s1 = sadd.s32 4294967295, %s1804_s11   ;;  %s1239_s16 = sadd.s32 4294967294, %s1804_s11  }
  0x59   : > { %1334 = dma.hbm_to_vmem [thread:$0]  (!%p2490_p3), %s1977_s21, 16, %s338_s8, %s2491_s30  }
  0x5a   : > { %s41_s18 = sadd.s32 1, %s1796_s9  ;;  %s44_s7 = sadd.s32 1, %s1800_s10 }
  0x5b   : > { %p42_p4 = scmp.ge.s32.totalorder %s41_s18, 2  ;;  %s51_s22 = sadd.s32 1, %s1784_s29 }
  0x5c   : > { %p64_p2 = scmp.ne.s32.totalorder %s1780_s28, %s1776_s27  ;;  %p65_p13 = scmp.eq.s32.totalorder %s2007_s1, 0 }
  0x5d   : > { %s2541_s18 = smov (%p42_p4, %s41_s18), 0  ;;  %s2543_s7 = smov (!%p42_p4, %s44_s7), %s1800_s10 }
  0x5e   : > { %2492 = sst [smem:[#allocation28_spill]] %s2541_s18  ;;  %s178_s21 = ssub.s32 %s1796_s9, %s2541_s18 }
  0x5f   : > { %p46_p6 = scmp.ge.s32.totalorder %s2543_s7, 2  ;;  %s183_s8 = sadd.s32 1, %s1772_s26 }
  0x60   : > { %p2024_p8 = por %p65_p13, %p64_p2  ;;  %p190_p10 = scmp.ne.s32.totalorder %s1772_s26, %s1768_s25 }
  0x61   : > { %s2545_s7 = smov (%p46_p6, %s2543_s7), 0  ;;  %p2495_p11 = scmp.eq.s32.totalorder %s1804_s11, 0 }
  0x62   : > { %s2493_s19 = scalar_select %p2024_p8, 1, 0 }
  0x63   : > { %2494 = sst [smem:[#allocation29_spill]] %s2545_s7  ;;  %p2034_p9 = por %p190_p10, %p2495_p11 }
  0x64   : > { %p196_p1 = scmp.ne.s32.totalorder %s1768_s25, %s1764_s24  ;;  %s48_s17 = ssub.s32 %s1800_s10, %s2545_s7 }
  0x65   : > { %p250_p5 = scmp.eq.s32.totalorder %s2007_s1, 3  ;;  %p49_p12 = scmp.eq.s32.totalorder %s48_s17, 0 }
  0x66   : > { %s180_s20 = sor.u32 %s178_s21, %s48_s17  ;;  %p2045_p4 = por %p196_p1, %p65_p13 }
  0x67   : > { %p181_p0 = scmp.eq.s32.totalorder %s180_s20, 0  ;;  %p2055_p2 = por %p250_p5, %p190_p10 }
  0x68   : > { %s2497_s30 = scalar_select %p2045_p4, 1, 0 }
  0x69   : > { %s2050_s3 = scalar_select %p49_p12, %s1784_s29, %s51_s22  }
  0x6a   : > { %2498 = sst [smem:[#allocation30_spill]] %s2497_s30  ;;  %p256_p6 = scmp.eq.s32.totalorder %s1239_s16, 3 }
  0x6b   : > { %2499 = sst [smem:[#allocation31_spill]] %s2050_s3  ;;  %s2459_s7 = sand.u32 1, %s1772_s26  }
  0x6c   : > { %s2053_s18 = scalar_select %p181_p0, %s1772_s26, %s183_s8  }
  0x6d   : > { %s2500_s24 = scalar_select %p2055_p2, 1, 0 }
  0x6e   : > { %p2060_p11 = por %p256_p6, %p196_p1  ;;  %s1247_s21 = sshll.u32 %s1796_s9, 1 }
  0x6f   : > { %s364_s17 = scalar_lea.vmem [#allocation11], %s2459_s7  ;;  %s369_s30 = sadd.s32 %s1800_s10, %s1247_s21 }
  0x70   : > { %s2501_s25 = scalar_select %p2060_p11, 1, 0 }
  0x71   : > { %s373_s20 = sshll.u32 %s364_s17, 4  ;;  %s1248_s22 = sshll.u32 %s369_s30, 4  ;;  %s2068_s20 = int_to_ptr.vmem [resolvable:$true] %s373_s20 }
  0x72   : > { %p2502_p13 = scmp.lt.s32.totalorder %s1804_s11, 4  ;;  %s2504_s5 = sld [smem:[#allocation37_spill]] }
  0x73   : > { %s2086_s27 = scalar_lea.hbm %s2443_s6, %s1248_s22  ;;  %s2463_s30 = scalar_lea.sflag [#allocation12], %s1924_s14 }
  0x74   : > { %p2074_p10 = pnand %p2502_p13, %p2034_p9 }
  0x76   : > { %s2503_s8 = scalar_select %p2074_p10, 1, 0 }
  0x77   : > { %p2465_p1 = pneg %p2074_p10 }
  0x78   : > { %s2081_s29 = scalar_lea.hbm %s2504_s5, %s1248_s22  ;;  %s1525_s16 = scalar_lea.hbm %s2504_s5, 64 }
  0x79   : > { %s1520_s21 = scalar_lea.hbm %s2081_s29, 16  ;;  %p1526_p0 = scmp.lt.u32.totalorder %s2081_s29, %s2504_s5 }
  0x7a   : > { %p1521_p9 = scmp.ne.s32.totalorder %s2081_s29, %s1520_s21  ;;  %p1527_p6 = scmp.lt.u32.totalorder %s1525_s16, %s1520_s21 }
  0x7b   : > { %p1529_p11 = scmp.lt.u32.totalorder %s1520_s21, %s2081_s29 }
  0x7c   : > { %p1523_p5 = pnand %p2465_p1, %p1521_p9  ;;  %p1528_p13 = por %p1527_p6, %p1526_p0 }
  0x7e   : > { %p1524_p12 = pneg %p1523_p5  ;;  %p1530_p2 = por %p1529_p11, %p1528_p13 }
  0x80   : > { %p1531_p4 = pnand %p1530_p2, %p1524_p12 }
  0x82   : > { %1534 = shalt.err (!%p1531_p4)
}
  0x83   : > { %s1535_s22 = scalar_lea.vmem %s2068_s20, 16  ;;  %s1808_s3 = smov [#allocation11]  }
  0x84   : > { %p1536_p9 = scmp.ne.s32.totalorder %s2068_s20, %s1535_s22  ;;  %s1540_s17 = sshll.u32 %s1808_s3, 4  ;;  %s1541_s17 = int_to_ptr.vmem [resolvable:$false] %s1540_s17 }
  0x85   : > { %s1542_s9 = scalar_lea.vmem %s1541_s17, 32  ;;  %p1543_p3 = scmp.lt.s32.totalorder %s2068_s20, %s1541_s17 }
  0x86   : > { %p1538_p5 = pnand %p1536_p9, %p2465_p1  ;;  %p1544_p0 = scmp.lt.s32.totalorder %s1542_s9, %s1535_s22 }
  0x88   : > { %p1539_p8 = pneg %p1538_p5  ;;  %p1545_p6 = por %p1544_p0, %p1543_p3 }
  0x8a   : > { %p1546_p11 = pnand %p1545_p6, %p1539_p8 }
  0x8c   : > { %1549 = shalt.err (!%p1546_p11)
}
  0x8d   : > { %1340 = dma.hbm_to_vmem [thread:$0]  (!%p2074_p10), %s2081_s29, 16, %s2068_s20, %s2463_s30  }
  0x8e   : > { %s2505_s0 = sld [smem:[#allocation32_spill]]  ;;  %s279_s22 = scalar_lea.vmem [#allocation2], %s1918_s12 }
  0x8f   : > { %s286_s3 = sshll.u32 %s279_s22, 4  ;;  %s277_s17 = scalar_lea.sflag [#allocation3], %s1918_s12  ;;  %s287_s3 = int_to_ptr.vmem [resolvable:$true] %s286_s3 }
  0x94   : > { %s2120_s7 = scalar_lea.hbm %s2505_s0, %s1921_s13  ;;  %s1555_s20 = scalar_lea.hbm %s2505_s0, 32 }
  0x95   : > { %s1550_s9 = scalar_lea.hbm %s2120_s7, 16  ;;  %p1556_p2 = scmp.lt.u32.totalorder %s2120_s7, %s2505_s0 }
  0x96   : > { %p1551_p3 = scmp.ne.s32.totalorder %s2120_s7, %s1550_s9  ;;  %p1557_p12 = scmp.lt.u32.totalorder %s1555_s20, %s1550_s9 }
  0x97   : > { %p1559_p9 = scmp.lt.u32.totalorder %s1550_s9, %s2120_s7 }
  0x98   : > { %p1553_p8 = pnand %p1551_p3, %p1947_p7  ;;  %p1558_p13 = por %p1557_p12, %p1556_p2 }
  0x9a   : > { %p1554_p4 = pneg %p1553_p8  ;;  %p1560_p5 = por %p1559_p9, %p1558_p13 }
  0x9c   : > { %p1561_p0 = pnand %p1560_p5, %p1554_p4 }
  0x9e   : > { %1564 = shalt.err (!%p1561_p0)
}
  0x9f   : > { %s1565_s22 = scalar_lea.vmem %s287_s3, 16  ;;  %s1809_s30 = smov [#allocation2]  }
  0xa0   : > { %p1566_p6 = scmp.ne.s32.totalorder %s287_s3, %s1565_s22  ;;  %s1570_s10 = sshll.u32 %s1809_s30, 4  ;;  %s1571_s10 = int_to_ptr.vmem [resolvable:$false] %s1570_s10 }
  0xa1   : > { %s1572_s5 = scalar_lea.vmem %s1571_s10, 32  ;;  %p1573_p8 = scmp.lt.s32.totalorder %s287_s3, %s1571_s10 }
  0xa2   : > { %p1568_p11 = pnand %p1566_p6, %p1947_p7  ;;  %p1574_p1 = scmp.lt.s32.totalorder %s1572_s5, %s1565_s22 }
  0xa4   : > { %p1569_p3 = pneg %p1568_p11  ;;  %p1575_p10 = por %p1574_p1, %p1573_p8 }
  0xa6   : > { %p1576_p2 = pnand %p1575_p10, %p1569_p3 }
  0xa8   : > { %1579 = shalt.err (!%p1576_p2)
}
  0xa9   : > { %p2506_p12 = scmp.ne.s32.totalorder %s2482_s15, 0  ;;  %s2507_s2 = sld [smem:[#allocation34_spill]] }
  0xaa   : > { %s313_s10 = scalar_lea.vmem [#allocation7], %s1918_s12 }
  0xab   : > { %1325 = dma.hbm_to_vmem [thread:$0]  (!%p2506_p12), %s2120_s7, 16, %s287_s3, %s277_s17  }
  0xac   : > { %s320_s30 = sshll.u32 %s313_s10, 4  ;;  %s321_s30 = int_to_ptr.vmem [resolvable:$true] %s320_s30 }
  0xaf   : > { %s2145_s20 = scalar_lea.hbm %s2507_s2, %s1921_s13  ;;  %s1585_s7 = scalar_lea.hbm %s2507_s2, 32 }
  0xb0   : > { %s1580_s21 = scalar_lea.hbm %s2145_s20, 16  ;;  %p1586_p13 = scmp.lt.u32.totalorder %s2145_s20, %s2507_s2 }
  0xb1   : > { %p1581_p10 = scmp.ne.s32.totalorder %s2145_s20, %s1580_s21  ;;  %p1587_p9 = scmp.lt.u32.totalorder %s1585_s7, %s1580_s21 }
  0xb2   : > { %p1589_p0 = scmp.lt.u32.totalorder %s1580_s21, %s2145_s20 }
  0xb3   : > { %p1583_p1 = pnand %p1581_p10, %p1947_p7  ;;  %p1588_p5 = por %p1587_p9, %p1586_p13 }
  0xb5   : > { %p1584_p4 = pneg %p1583_p1  ;;  %p1590_p6 = por %p1589_p0, %p1588_p5 }
  0xb7   : > { %p1591_p11 = pnand %p1590_p6, %p1584_p4 }
  0xb9   : > { %1594 = shalt.err (!%p1591_p11)
}
  0xba   : > { %s1595_s5 = scalar_lea.vmem %s321_s30, 16  ;;  %s1810_s9 = smov [#allocation7]  }
  0xbb   : > { %p1596_p3 = scmp.ne.s32.totalorder %s321_s30, %s1595_s5  ;;  %s1600_s29 = sshll.u32 %s1810_s9, 4  ;;  %s1601_s29 = int_to_ptr.vmem [resolvable:$false] %s1600_s29 }
  0xbc   : > { %s1602_s10 = scalar_lea.vmem %s1601_s29, 32  ;;  %p1603_p10 = scmp.lt.s32.totalorder %s321_s30, %s1601_s29 }
  0xbd   : > { %p1598_p8 = pnand %p1596_p3, %p1947_p7  ;;  %p1604_p1 = scmp.lt.s32.totalorder %s1602_s10, %s1595_s5 }
  0xbf   : > { %p1599_p2 = pneg %p1598_p8  ;;  %p1605_p12 = por %p1604_p1, %p1603_p10 }
  0xc1   : > { %p1606_p9 = pnand %p1605_p12, %p1599_p2 }
  0xc3   : > { %1609 = shalt.err (!%p1606_p9)
}
  0xc4   : > { %p2508_p13 = scmp.ne.s32.totalorder %s2482_s15, 0  ;;  %s2509_s21 = scalar_lea.sflag [#allocation6], %s1924_s14 }
  0xc5   : > { %s2510_s4 = sld [smem:[#allocation36_spill]]  ;;  %s347_s3 = scalar_lea.vmem [#allocation10], %s1918_s12 }
  0xc6   : > { %1331 = dma.hbm_to_vmem [thread:$0]  (!%p2508_p13), %s2145_s20, 16, %s321_s30, %s2509_s21  }
  0xc7   : > { %s354_s17 = sshll.u32 %s347_s3, 4  ;;  %s2511_s5 = sand.u32 1, %s1772_s26   ;;  %s2174_s17 = int_to_ptr.vmem [resolvable:$true] %s354_s17 }
  0xc8   : > { %s2178_s9 = scalar_lea.vmem [#allocation13], %s2511_s5 }
  0xc9   : > { %s392_s29 = sshll.u32 %s2178_s9, 4  ;;  %s393_s29 = int_to_ptr.vmem [resolvable:$true] %s392_s29 }
  0xcb   : > { %s2171_s7 = scalar_lea.hbm %s2510_s4, %s1921_s13  ;;  %s1615_s30 = scalar_lea.hbm %s2510_s4, 32 }
  0xcc   : > { %s1610_s10 = scalar_lea.hbm %s2171_s7, 16  ;;  %p1616_p0 = scmp.lt.u32.totalorder %s2171_s7, %s2510_s4 }
  0xcd   : > { %p1611_p12 = scmp.ne.s32.totalorder %s2171_s7, %s1610_s10  ;;  %p1617_p6 = scmp.lt.u32.totalorder %s1615_s30, %s1610_s10 }
  0xce   : > { %p1619_p3 = scmp.lt.u32.totalorder %s1610_s10, %s2171_s7 }
  0xcf   : > { %p1613_p4 = pnand %p1611_p12, %p1947_p7  ;;  %p1618_p11 = por %p1617_p6, %p1616_p0 }
  0xd1   : > { %p1614_p5 = pneg %p1613_p4  ;;  %p1620_p8 = por %p1619_p3, %p1618_p11 }
  0xd3   : > { %p1621_p2 = pnand %p1620_p8, %p1614_p5 }
  0xd5   : > { %1624 = shalt.err (!%p1621_p2)
}
  0xd6   : > { %s1625_s12 = scalar_lea.vmem %s2174_s17, 16  ;;  %s1811_s22 = smov [#allocation10]  }
  0xd7   : > { %p1626_p10 = scmp.ne.s32.totalorder %s2174_s17, %s1625_s12  ;;  %s1630_s3 = sshll.u32 %s1811_s22, 4  ;;  %s1631_s3 = int_to_ptr.vmem [resolvable:$false] %s1630_s3 }
  0xd8   : > { %s1632_s5 = scalar_lea.vmem %s1631_s3, 32  ;;  %p1633_p12 = scmp.lt.s32.totalorder %s2174_s17, %s1631_s3 }
  0xd9   : > { %p1628_p1 = pnand %p1626_p10, %p1947_p7  ;;  %p1634_p4 = scmp.lt.s32.totalorder %s1632_s5, %s1625_s12 }
  0xdb   : > { %p1629_p9 = pneg %p1628_p1  ;;  %p1635_p0 = por %p1634_p4, %p1633_p12 }
  0xdd   : > { %p1636_p6 = pnand %p1635_p0, %p1629_p9 }
  0xdf   : > { %1639 = shalt.err (!%p1636_p6)
}
  0xe0   : > { %s2512_s9 = scalar_lea.sflag [#allocation9], %s1924_s14  ;;  %s1640_s23 = scalar_lea.hbm %s2086_s27, 16 }
  0xe1   : > { %1337 = dma.hbm_to_vmem [thread:$0]  (!%p2508_p13), %s2171_s7, 16, %s2174_s17, %s2512_s9  }
  0xe2   : > { %p1641_p7 = scmp.ne.s32.totalorder %s2086_s27, %s1640_s23  ;;  %p2513_p5 = scmp.ne.s32.totalorder %s2503_s8, 0 }
  0xe3   : > { %s1645_s15 = scalar_lea.hbm %s2443_s6, 64  ;;  %p1646_p2 = scmp.lt.u32.totalorder %s2086_s27, %s2443_s6 }
  0xe4   : > { %p2514_p11 = pneg %p2513_p5  ;;  %p1647_p10 = scmp.lt.u32.totalorder %s1645_s15, %s1640_s23 }
  0xe5   : > { %p1649_p9 = scmp.lt.u32.totalorder %s1640_s23, %s2086_s27 }
  0xe6   : > { %p1643_p3 = pnand %p1641_p7, %p2514_p11  ;;  %p1648_p1 = por %p1647_p10, %p1646_p2 }
  0xe8   : > { %p1644_p8 = pneg %p1643_p3  ;;  %p1650_p12 = por %p1649_p9, %p1648_p1 }
  0xea   : > { %p1651_p13 = pnand %p1650_p12, %p1644_p8 }
  0xec   : > { %1654 = shalt.err (!%p1651_p13)
}
  0xed   : > { %s1655_s7 = scalar_lea.vmem %s393_s29, 16  ;;  %p2515_p0 = pmov %p2514_p11 }
  0xee   : > { %p1656_p4 = scmp.ne.s32.totalorder %s393_s29, %s1655_s7  ;;  %s1812_s17 = smov [#allocation13]  }
  0xef   : > { %s1660_s21 = sshll.u32 %s1812_s17, 4  ;;  %s1661_s21 = int_to_ptr.vmem [resolvable:$false] %s1660_s21 }
  0xf0   : > { %p1658_p6 = pnand %p1656_p4, %p2515_p0  ;;  %s1662_s16 = scalar_lea.vmem %s1661_s21, 32 }
  0xf1   : > { %p1663_p11 = scmp.lt.s32.totalorder %s393_s29, %s1661_s21  ;;  %p1664_p3 = scmp.lt.s32.totalorder %s1662_s16, %s1655_s7 }
  0xf2   : > { %p1659_p7 = pneg %p1658_p6 }
  0xf3   : > { %p1665_p2 = por %p1664_p3, %p1663_p11 }
  0xf5   : > { %p1666_p10 = pnand %p1665_p2, %p1659_p7 }
  0xf7   : > { %1669 = shalt.err (!%p1666_p10)
}
  0xf8   : > { %s2516_s12 = scalar_lea.sflag [#allocation12], %s1924_s14  ;;  %s2517_s22 = sld [smem:[#allocation27_spill]] }
  0xf9   : > { %1343 = dma.hbm_to_vmem [thread:$0]  (!%p2513_p5), %s2086_s27, 16, %s393_s29, %s2516_s12  }
  0xfe   : > { %p2518_p8 = scmp.ne.s32.totalorder %s2517_s22, 0 }
  0xff   : > { %s2228_s3 = sand.u32 (!%p2518_p8), 1, %s1780_s28   ;;  %p2519_p1 = scmp.ne.s32.totalorder (!%p2518_p8), %s2493_s19, 0 }
 0x100   : > { %401 = sbr.rel (%p2518_p8) target bundleno = 903 (0x387), region = 48  ;;  %s404_s5 = scalar_lea.sflag (!%p2518_p8), [#allocation3], %s2228_s3 }
 0x101   : > { %s406_s9 = scalar_lea.vmem (!%p2518_p8), [#allocation2], %s2228_s3 }
 0x107   : > { %1743 = dma.done.wait (%p2519_p1), %s404_s5, 16  }
 0x108   : > { %1745 = vsyncadd (%p2519_p1), %s404_s5, 4294967280  ;;  %s411_s14 = sand.u32 1, %s2007_s1   ;;  %s414_s27 = scalar_lea.vmem [#allocation5], %s2228_s3 }
 0x109   : > { %s412_s8 = scalar_lea.sflag [#allocation6], %s411_s14 }
 0x10a   : > { %1747 = dma.done.wait (%p2519_p1), %s412_s8, 32  }
 0x10b   : > { %1749 = vsyncadd (%p2519_p1), %s412_s8, 4294967264  ;;  %s422_s29 = scalar_lea.vmem [#allocation7], %s2228_s3  ;;  %s428_s23 = scalar_lea.sflag [#allocation9], %s411_s14 }
 0x10c   : > { %s430_s10 = scalar_lea.vmem [#allocation8], %s2228_s3 }
 0x10d   : > { %1751 = dma.done.wait (%p2519_p1), %s428_s23, 32  }
 0x10e   : > { %1753 = vsyncadd (%p2519_p1), %s428_s23, 4294967264  ;;  %s2520_s13 = sld [smem:[#allocation21_spill]]  ;;  %s2521_s1 = sld [smem:[#allocation30_spill]] }
 0x10f   : > { %s438_s20 = scalar_lea.vmem [#allocation10], %s2228_s3  ;;  %s444_s30 = scalar_lea.sflag [#allocation12], %s411_s14 }
 0x114   : > { %s2249_s15 = sand.u32 1, %s2520_s13   ;;  %p2522_p5 = scmp.ne.s32.totalorder %s2521_s1, 0 }
 0x115   : > { %s446_s7 = scalar_lea.vmem [#allocation11], %s2249_s15 }
 0x116   : > { %1755 = dma.done.wait (%p2522_p5), %s444_s30, 32  }
 0x117   : > { %1757 = vsyncadd (%p2522_p5), %s444_s30, 4294967264  ;;  %v508_v0 = vlaneseq  ;;  %v513_v2 = vld [vmem:[%s406_s9] sm:$0x1]  ;;  %s454_s19 = scalar_lea.vmem [#allocation13], %s2249_s15  ;;  %s1814_s22 = smov 1.0  }
 0x118   : > { %v519_v3 = vld [vmem:[%s454_s19] sm:$0x1]  ;;  %v2258_v4 = vsub.f32 2.0, %v513_v2  ;;  %v782_v5 = vsub.f32 0.0, %v513_v2  ;;  %s2523_s5 = sld [smem:[#allocation23_spill]]  ;;  %s2524_s9 = sld [smem:[#allocation24_spill]] }
 0x119   : > { %v509_v1 = vshrl.u32 %v508_v0, 7  ;;  %v518_v6 = vld [vmem:[%s446_s7] sm:$0x1]  ;;  %p2526_p12 = scmp.ne.s32.totalorder %s2500_s24, 0 }
 0x11a   : > { %v524_v7 = vmul.f32 %v2258_v4, %v519_v3  ;;  %v521_v8 = vmul.f32 %v2258_v4, %v518_v6  ;;  %v515_v10 = vld [vmem:[%s422_s29] sm:$0x1]  ;;  %v783_v12 = vmul.f32 %v782_v5, %v518_v6  ;;  %v786_v13 = vmul.f32 %v782_v5, %v519_v3 }
 0x11b   : > { %v510_v9 = vadd.s32 8, %v509_v1  ;;  %v514_v11 = vld [vmem:[%s414_s27] sm:$0x1]  ;;  %v2264_v20 = vsub.s32 0, %v509_v1  ;;  %v2268_v23 = vcvt.s32.f32 %v509_v1 }
 0x11c   : > { %v525_v14 = vmul.f32 16.0, %v524_v7  ;;  %v522_v15 = vmul.f32 16.0, %v521_v8  ;;  %v2262_v16 = vld [vmem:[%s430_s10] sm:$0x1]  ;;  %v784_v17 = vmul.f32 16.0, %v783_v12  ;;  %v787_v18 = vmul.f32 16.0, %v786_v13 }
 0x11d   : > { %v2266_v22 = vld [vmem:[%s438_s20] sm:$0x1]  ;;  %v2270_v24 = vcvt.s32.f32 %v510_v9  ;;  %v2274_v28 = vrot.slane %v2262_v16, %v2264_v20  ;;  %v585_v29 = vmul.f32 %v2262_v16, %v513_v2 }
 0x11e   : > { %v526_v19 = vadd.f32 %v525_v14, %v515_v10  ;;  %v523_v21 = vadd.f32 %v522_v15, %v514_v11  ;;  %v788_v25 = vadd.f32 %v787_v18, %v515_v10  ;;  %v2279_v30 = vrot.slane %v2266_v22, %v2264_v20  ;;  %s1256_s10 = sshll.u32 %s2523_s5, 1  ;;  %s1033_s5 = scalar_lea.sflag [#allocation4], %s2249_s15 }
 0x11f   : > { %v2282_v31 = vmul.f32 %v2266_v22, %v513_v2  ;;  %v785_v33 = vadd.f32 %v784_v17, %v514_v11  ;;  %v590_v60 = vrot.slane %v585_v29, %v2264_v20  ;;  %v833_v17 = vmul.f32 %v2258_v4, %v2262_v16  ;;  %s1043_s13 = sadd.s32 %s2524_s9, %s1256_s10 }
 0x120   : > { %v529_v26 = vfloor.f32 %v526_v19  ;;  %v527_v27 = vfloor.f32 %v523_v21  ;;  %v791_v32 = vfloor.f32 %v788_v25  ;;  %s1257_s20 = sshll.u32 %s1043_s13, 4 }
 0x121   : > { %v789_v61 = vfloor.f32 %v785_v33 }
 0x122   : > { %v530_v34 = vsub.f32 %v526_v19, %v529_v26  ;;  %v611_v35 = vrot.slane %v529_v26, %v2264_v20  ;;  %v624_v36 = vadd.f32 1.0, %v529_v26  ;;  %v528_v37 = vsub.f32 %v523_v21, %v527_v27 }
 0x123   : > { %v537_v38 = vrot.slane %v527_v27, %v2264_v20  ;;  %v550_v39 = vadd.f32 1.0, %v527_v27  ;;  %v792_v40 = vsub.f32 %v788_v25, %v791_v32  ;;  %v859_v41 = vrot.slane %v791_v32, %v2264_v20 }
 0x124   : > { %vm613_vm0 = vcmp.eq.f32.partialorder %v2268_v23, %v611_v35  ;;  %vm614_vm1 = vcmp.eq.f32.partialorder %v2270_v24, %v611_v35  ;;  %v615_v42 = vsub.f32 1.0, %v530_v34  ;;  %v629_v43 = vrot.slane %v624_v36, %v2264_v20 }
 0x125   : > { %v637_v44 = vrot.slane %v530_v34, %v2264_v20  ;;  %vm539_vm2 = vcmp.eq.f32.partialorder %v2268_v23, %v537_v38  ;;  %vm540_vm3 = vcmp.eq.f32.partialorder %v2270_v24, %v537_v38  ;;  %v541_v45 = vsub.f32 1.0, %v528_v37 }
 0x126   : > { %v620_v46 = vrot.slane %v615_v42, %v2264_v20  ;;  %vm631_vm4 = vcmp.eq.f32.partialorder %v2268_v23, %v629_v43  ;;  %vm632_vm5 = vcmp.eq.f32.partialorder %v2270_v24, %v629_v43  ;;  %v555_v47 = vrot.slane %v550_v39, %v2264_v20 }
 0x127   : > { %v639_v48 = vsel %vm631_vm4, %v637_v44, 0.0  ;;  %v640_v49 = vsel %vm632_vm5, %v637_v44, 0.0  ;;  %v546_v50 = vrot.slane %v541_v45, %v2264_v20  ;;  %v563_v51 = vrot.slane %v528_v37, %v2264_v20 }
 0x128   : > { %v622_v52 = vsel %vm613_vm0, %v620_v46, 0.0  ;;  %v623_v53 = vsel %vm614_vm1, %v620_v46, 0.0  ;;  %vm557_vm6 = vcmp.eq.f32.partialorder %v2268_v23, %v555_v47  ;;  %vm558_vm7 = vcmp.eq.f32.partialorder %v2270_v24, %v555_v47 }
 0x129   : > { %v641_v54 = vadd.f32 %v639_v48, %v622_v52  ;;  %v642_v55 = vadd.f32 %v640_v49, %v623_v53  ;;  %v548_v56 = vsel %vm539_vm2, %v546_v50, 0.0  ;;  %v549_v57 = vsel %vm540_vm3, %v546_v50, 0.0 }
 0x12a   : > { %v565_v58 = vsel %vm557_vm6, %v563_v51, 0.0  ;;  %v566_v59 = vsel %vm558_vm7, %v563_v51, 0.0  ;;  %v863_v1 = vsub.f32 1.0, %v792_v40  ;;  %vm861_vm8 = vcmp.eq.f32.partialorder %v2268_v23, %v859_v41 }
 0x12b   : > { %v643_v62 = vpack.c.bf16 %v642_v55, %v641_v54  ;;  %v567_v63 = vadd.f32 %v565_v58, %v548_v56  ;;  %v568_v0 = vadd.f32 %v566_v59, %v549_v57  ;;  %vm862_vm9 = vcmp.eq.f32.partialorder %v2270_v24, %v859_v41 }
 0x12c   : > { %v872_v2 = vadd.f32 1.0, %v791_v32  ;;  %v797_v3 = vrot.slane %v789_v61, %v2264_v20  ;;  %v885_v11 = vrot.slane %v792_v40, %v2264_v20  ;;  %v790_v12 = vsub.f32 %v785_v33, %v789_v61 }
 0x12d   : > { %1270 = vmatprep.subr.bf16.mxu0 %v643_v62  ;;  %v575_v5 = vmul.f32 %v2274_v28, %v567_v63  ;;  %v576_v6 = vmul.f32 %v2274_v28, %v568_v0  ;;  %v583_v7 = vmul.f32 %v2279_v30, %v567_v63  ;;  %v584_v8 = vmul.f32 %v2279_v30, %v568_v0 }
 0x12e   : > { %1271 = vmatpush3.bf16.xpose.msra.mxu0 %v643_v62  ;;  %v592_v9 = vmul.f32 %v590_v60, %v567_v63  ;;  %v593_v10 = vmul.f32 %v590_v60, %v568_v0  ;;  %v868_v14 = vrot.slane %v863_v1, %v2264_v20  ;;  %v877_v15 = vrot.slane %v872_v2, %v2264_v20 }
 0x12f   : > { %v603_v13 = vpack.c.bf16 %v576_v6, %v575_v5  ;;  %v604_v18 = vpack.c.bf16 %v584_v8, %v583_v7  ;;  %v599_v21 = vrot.slane %v2282_v31, %v2264_v20  ;;  %vm799_vm10 = vcmp.eq.f32.partialorder %v2268_v23, %v797_v3 }
 0x130   : > { %v605_v19 = vpack.c.bf16 %v593_v10, %v592_v9  ;;  %v870_v25 = vsel %vm861_vm8, %v868_v14, 0.0  ;;  %v871_v26 = vsel %vm862_vm9, %v868_v14, 0.0  ;;  %vm879_vm11 = vcmp.eq.f32.partialorder %v2268_v23, %v877_v15 }
 0x131   : > { %1272 = vmatprep.mubr.bf16.mxu0 %v603_v13  ;;  %vm880_vm12 = vcmp.eq.f32.partialorder %v2270_v24, %v877_v15  ;;  %v887_v27 = vsel %vm879_vm11, %v885_v11, 0.0  ;;  %v801_v29 = vsub.f32 1.0, %v790_v12  ;;  %v810_v32 = vadd.f32 1.0, %v789_v61 }
 0x132   : > { %v888_v16 = vsel %vm880_vm12, %v885_v11, 0.0  ;;  %v889_v33 = vadd.f32 %v887_v27, %v870_v25  ;;  %vm800_vm13 = vcmp.eq.f32.partialorder %v2270_v24, %v797_v3  ;;  %v823_v31 = vrot.slane %v790_v12, %v2264_v20 }
 0x133   : > { %v890_v34 = vadd.f32 %v888_v16, %v871_v26  ;;  %v806_v35 = vrot.slane %v801_v29, %v2264_v20  ;;  %v815_v36 = vrot.slane %v810_v32, %v2264_v20  ;;  %v601_v37 = vmul.f32 %v599_v21, %v567_v63 }
 0x134   : > { %v602_v38 = vmul.f32 %v599_v21, %v568_v0  ;;  %v838_v44 = vrot.slane %v833_v17, %v2264_v20  ;;  %v842_v45 = vmul.f32 %v2258_v4, %v2266_v22  ;;  %v1813_v1 = vmov 0.0  }
 0x135   : > { %1273 = vmatmul.mubr.bf16.vlgmr.msra.gmra.mrb[0].mxu0 %v604_v18  ;;  %v891_v39 = vpack.c.bf16 %v890_v34, %v889_v33  ;;  %v808_v40 = vsel %vm799_vm10, %v806_v35, 0.0  ;;  %v809_v41 = vsel %vm800_vm13, %v806_v35, 0.0  ;;  %vm817_vm14 = vcmp.eq.f32.partialorder %v2268_v23, %v815_v36 }
 0x136   : > { %1276 = vmatprep.mubr.bf16.mxu0 %v605_v19  ;;  %vm818_vm15 = vcmp.eq.f32.partialorder %v2270_v24, %v815_v36  ;;  %v825_v42 = vsel %vm817_vm14, %v823_v31, 0.0  ;;  %v606_v48 = vpack.c.bf16 %v602_v38, %v601_v37  ;;  %v847_v53 = vrot.slane %v842_v45, %v2264_v20 }
 0x137   : > { %1280 = vmatprep.subr.bf16.mxu1 %v891_v39  ;;  %v826_v43 = vsel %vm818_vm15, %v823_v31, 0.0  ;;  %v827_v46 = vadd.f32 %v825_v42, %v808_v40  ;;  %vm735_vm1 = vcmask 130048  }
 0x138   : > { %1281 = vmatpush3.bf16.xpose.msra.mxu1 %v891_v39  ;;  %v828_v47 = vadd.f32 %v826_v43, %v809_v41 }
 0x139   : > { %v829_v49 = vmul.f32 %v827_v46, %v2274_v28  ;;  %v831_v23 = vmul.f32 %v827_v46, %v2279_v30  ;;  %v840_v51 = vmul.f32 %v838_v44, %v827_v46  ;;  %v849_v22 = vmul.f32 %v847_v53, %v827_v46 }
 0x13a   : > { %v830_v50 = vmul.f32 %v828_v47, %v2274_v28  ;;  %v832_v24 = vmul.f32 %v828_v47, %v2279_v30  ;;  %v841_v52 = vmul.f32 %v838_v44, %v828_v47  ;;  %v850_v56 = vmul.f32 %v847_v53, %v828_v47 }
 0x13c   : > { %v851_v54 = vpack.c.bf16 %v830_v50, %v829_v49  ;;  %v852_v55 = vpack.c.bf16 %v832_v24, %v831_v23  ;;  %v853_v4 = vpack.c.bf16 %v841_v52, %v840_v51  ;;  %v854_v57 = vpack.c.bf16 %v850_v56, %v849_v22 }
 0x13d   : > { %1277 = vmatmul.mubr.bf16.gmra.mrb[4].mxu0 %v606_v48 }
 0x13e   : > { %1282 = vmatprep.mubr.bf16.mxu1 %v851_v54 }
 0x13f   : > { %1283 = vmatmul.mubr.bf16.vlgmr.msra.gmra.mrb[0].mxu1 %v852_v55 }
 0x140   : > { %1286 = vmatprep.mubr.bf16.mxu1 %v853_v4 }
 0x147   : > { %1287 = vmatmul.mubr.bf16.gmra.mrb[4].mxu1 %v854_v57 }
 0x208   : > { %v1274_v28 = vpop.f32.mrb[0].mxu0 }
 0x209   : > { %v717_v58 = vadd.f32 1e-09, %v1274_v28  ;;  %v678_v59 = vpop.f32.mrb[1].mxu0 }
 0x20a   : > { %v709_v60 = vadd.f32 1e-09, %v678_v59  ;;  %v725_v30 = vadd.f32 %v1274_v28, %v678_v59  ;;  %v1275_v61 = vpop.f32.mrb[2].mxu0 }
 0x20b   : > { %1440 = vrcp.f32 %v717_v58  ;;  %v718_v62 = vadd.f32 1e-09, %v1275_v61  ;;  %v681_v20 = vpop.f32.mrb[3].mxu0 }
 0x20c   : > { %1442 = vrcp.f32 %v709_v60  ;;  %vm727_vm0 = vcmp.gt.f32.partialorder %v725_v30, 0.0  ;;  %v710_v63 = vadd.f32 1e-09, %v681_v20  ;;  %v726_v0 = vadd.f32 %v1275_v61, %v681_v20 }
 0x20d   : > { %1444 = vrcp.f32 %v718_v62  ;;  %v1252_v2 = vsel %vm727_vm0, 1.0, %v1813_v1 }
 0x20e   : > { %1446 = vrcp.f32 %v710_v63  ;;  %vm728_vm2 = vcmp.gt.f32.partialorder %v726_v0, 0.0  ;;  %v764_v6 = vsel %vm735_vm1, %v1252_v2, 0.0 }
 0x20f   : > { %v1253_v3 = vsel %vm728_vm2, 1.0, %v1813_v1 }
 0x210   : > { %v1278_v5 = vpop.f32.mrb[4].mxu0  ;;  %v765_v7 = vsel %vm735_vm1, %v1253_v3, 0.0 }
 0x211   : > { %v766_v8 = vadd.f32 %v765_v7, %v764_v6  ;;  %v694_v9 = vpop.f32.mrb[5].mxu0 }
 0x212   : > { %v1279_v10 = vpop.f32.mrb[6].mxu0  ;;  %v1284_v11 = vpop.f32.mrb[0].mxu1 }
 0x213   : > { %767 = vadd.xlane.f32.xlu1 %v766_v8  ;;  %v697_v12 = vpop.f32.mrb[7].mxu0  ;;  %v965_v13 = vadd.f32 1e-09, %v1284_v11  ;;  %v926_v14 = vpop.f32.mrb[1].mxu1 }
 0x214   : > { %v957_v15 = vadd.f32 1e-09, %v926_v14  ;;  %v973_v17 = vadd.f32 %v1284_v11, %v926_v14  ;;  %v1285_v18 = vpop.f32.mrb[2].mxu1 }
 0x215   : > { %v1441_v19 = vpop.eup %1440  ;;  %1448 = vrcp.f32 %v965_v13  ;;  %v966_v21 = vadd.f32 1e-09, %v1285_v18  ;;  %v929_v25 = vpop.f32.mrb[3].mxu1 }
 0x216   : > { %v1443_v26 = vpop.eup %1442  ;;  %v721_v27 = vmul.f32 %v1441_v19, %v1278_v5  ;;  %1450 = vrcp.f32 %v957_v15  ;;  %vm975_vm3 = vcmp.gt.f32.partialorder %v973_v17, 0.0  ;;  %v958_v16 = vadd.f32 1e-09, %v929_v25 }
 0x217   : > { %v1445_v29 = vpop.eup %1444  ;;  %v713_v32 = vmul.f32 %v1443_v26, %v694_v9  ;;  %v1254_v33 = vsel %vm975_vm3, 1.0, %v1813_v1  ;;  %1452 = vrcp.f32 %v966_v21  ;;  %v974_v34 = vadd.f32 %v1285_v18, %v929_v25 }
 0x218   : > { %v1447_v31 = vpop.eup %1446  ;;  %v723_v35 = vmul.f32 0.5, %v721_v27  ;;  %v722_v36 = vmul.f32 %v1445_v29, %v1279_v10  ;;  %1454 = vrcp.f32 %v958_v16  ;;  %v1011_v39 = vsel %vm735_vm1, %v1254_v33, 0.0 }
 0x219   : > { %v715_v37 = vmul.f32 0.5, %v713_v32  ;;  %v714_v38 = vmul.f32 %v1447_v31, %v697_v12  ;;  %vm976_vm4 = vcmp.gt.f32.partialorder %v974_v34, 0.0 }
 0x21a   : > { %v749_v40 = vmul.f32 %v723_v35, %v723_v35  ;;  %v724_v41 = vmul.f32 0.5, %v722_v36  ;;  %v1255_v42 = vsel %vm976_vm4, 1.0, %v1813_v1  ;;  %v1288_v43 = vpop.f32.mrb[4].mxu1 }
 0x21b   : > { %v733_v44 = vmul.f32 %v715_v37, %v715_v37  ;;  %v716_v45 = vmul.f32 0.5, %v714_v38  ;;  %v942_v46 = vpop.f32.mrb[5].mxu1  ;;  %v1012_v47 = vsel %vm735_vm1, %v1255_v42, 0.0 }
 0x21c   : > { %v750_v48 = vmul.f32 %v724_v41, %v724_v41  ;;  %v1289_v49 = vpop.f32.mrb[6].mxu1  ;;  %v1013_v50 = vadd.f32 %v1012_v47, %v1011_v39  ;;  %v751_v51 = vsel %vm735_vm1, %v749_v40, 0.0 }
 0x21d   : > { %v734_v23 = vmul.f32 %v716_v45, %v716_v45  ;;  %v945_v24 = vpop.f32.mrb[7].mxu1  ;;  %v736_v54 = vsel %vm735_vm1, %v733_v44, 0.0 }
 0x21e   : > { %v752_v52 = vsel %vm735_vm1, %v750_v48, 0.0 }
 0x21f   : > { %v1449_v53 = vpop.eup %1448  ;;  %v737_v55 = vsel %vm735_vm1, %v734_v23, 0.0  ;;  %v753_v4 = vadd.f32 %v752_v52, %v751_v51 }
 0x220   : > { %v1451_v22 = vpop.eup %1450  ;;  %v738_v56 = vadd.f32 %v737_v55, %v736_v54  ;;  %v969_v57 = vmul.f32 %v1449_v53, %v1288_v43 }
 0x221   : > { %v1453_v28 = vpop.eup %1452  ;;  %v961_v58 = vmul.f32 %v1451_v22, %v942_v46 }
 0x222   : > { %v1455_v59 = vpop.eup %1454  ;;  %739 = vadd.xlane.f32.xlu0 %v738_v56  ;;  %v971_v60 = vmul.f32 0.5, %v969_v57  ;;  %v970_v30 = vmul.f32 %v1453_v28, %v1289_v49 }
 0x223   : > { %v963_v61 = vmul.f32 0.5, %v961_v58  ;;  %v962_v62 = vmul.f32 %v1455_v59, %v945_v24 }
 0x224   : > { %v996_v20 = vmul.f32 %v971_v60, %v971_v60  ;;  %v972_v63 = vmul.f32 0.5, %v970_v30 }
 0x225   : > { %v981_v0 = vmul.f32 %v963_v61, %v963_v61  ;;  %v964_v1 = vmul.f32 0.5, %v962_v62 }
 0x226   : > { %754 = vadd.xlane.f32.xlu0 %v753_v4  ;;  %v997_v2 = vmul.f32 %v972_v63, %v972_v63  ;;  %v998_v3 = vsel %vm735_vm1, %v996_v20, 0.0 }
 0x227   : > { %v982_v5 = vmul.f32 %v964_v1, %v964_v1  ;;  %v983_v6 = vsel %vm735_vm1, %v981_v0, 0.0 }
 0x228   : > { %v999_v7 = vsel %vm735_vm1, %v997_v2, 0.0 }
 0x229   : > { %v984_v8 = vsel %vm735_vm1, %v982_v5, 0.0  ;;  %v1000_v9 = vadd.f32 %v999_v7, %v998_v3 }
 0x22a   : > { %v985_v10 = vadd.f32 %v984_v8, %v983_v6 }
 0x22b   : > { %1001 = vadd.xlane.f32.xlu0 %v1000_v9 }
 0x22c   : > { %986 = vadd.xlane.f32.xlu1 %v985_v10 }
 0x230   : > { %1014 = vadd.xlane.f32.xlu1 %v1013_v50 }
 0x2a0   : > { %v768_v11 = vpop.xlane.xlu1 %767 }
 0x2a1   : > { %v769_v12 = vrot.slane %v768_v11, 4 }
 0x2a3   : > { %v770_v13 = vadd.f32 %v769_v12, %v768_v11 }
 0x2a5   : > { %v771_v18 = vrot.slane %v770_v13, 2 }
 0x2a7   : > { %v772_v16 = vadd.f32 %v771_v18, %v770_v13 }
 0x2a9   : > { %v773_v31 = vrot.slane %v772_v16, 1 }
 0x2ab   : > { %v774_v37 = vadd.f32 %v773_v31, %v772_v16 }
 0x2af   : > { %v740_v14 = vpop.xlane.xlu0 %739 }
 0x2b0   : > { %v741_v15 = vrot.slane %v740_v14, 4 }
 0x2b2   : > { %v742_v17 = vadd.f32 %v741_v15, %v740_v14 }
 0x2b3   : > { %v755_v19 = vpop.xlane.xlu0 %754 }
 0x2b4   : > { %v743_v21 = vrot.slane %v742_v17, 2  ;;  %v756_v25 = vrot.slane %v755_v19, 4 }
 0x2b6   : > { %v757_v26 = vadd.f32 %v756_v25, %v755_v19  ;;  %v744_v27 = vadd.f32 %v743_v21, %v742_v17 }
 0x2b8   : > { %v758_v29 = vrot.slane %v757_v26, 2  ;;  %v745_v32 = vrot.slane %v744_v27, 1  ;;  %v1002_v39 = vpop.xlane.xlu0 %1001 }
 0x2b9   : > { %v987_v38 = vpop.xlane.xlu1 %986  ;;  %v1003_v42 = vrot.slane %v1002_v39, 4 }
 0x2ba   : > { %v746_v33 = vadd.f32 %v745_v32, %v744_v27  ;;  %v759_v34 = vadd.f32 %v758_v29, %v757_v26  ;;  %v988_v41 = vrot.slane %v987_v38, 4 }
 0x2bb   : > { %v1004_v45 = vadd.f32 %v1003_v42, %v1002_v39 }
 0x2bc   : > { %1290 = vpush %v746_v33  ;;  %v760_v35 = vrot.slane %v759_v34, 1  ;;  %v989_v44 = vadd.f32 %v988_v41, %v987_v38 }
 0x2bd   : > { %v1015_v40 = vpop.xlane.xlu1 %1014  ;;  %v1005_v48 = vrot.slane %v1004_v45, 2 }
 0x2be   : > { %v761_v36 = vadd.f32 %v760_v35, %v759_v34  ;;  %v1016_v43 = vrot.slane %v1015_v40, 4  ;;  %v990_v47 = vrot.slane %v989_v44, 2 }
 0x2bf   : > { %v1006_v24 = vadd.f32 %v1005_v48, %v1004_v45 }
 0x2c0   : > { %1292 = vpush %v761_v36  ;;  %v1017_v46 = vadd.f32 %v1016_v43, %v1015_v40  ;;  %v991_v23 = vadd.f32 %v990_v47, %v989_v44 }
 0x2c1   : > { %1294 = vpush %v774_v37  ;;  %v1007_v53 = vrot.slane %v1006_v24, 1 }
 0x2c2   : > { %v1018_v50 = vrot.slane %v1017_v46, 2  ;;  %v992_v52 = vrot.slane %v991_v23, 1 }
 0x2c3   : > { %v1008_v22 = vadd.f32 %v1007_v53, %v1006_v24 }
 0x2c4   : > { %v1019_v51 = vadd.f32 %v1018_v50, %v1017_v46  ;;  %v993_v4 = vadd.f32 %v992_v52, %v991_v23 }
 0x2c6   : > { %v1020_v54 = vrot.slane %v1019_v51, 1 }
 0x2c8   : > { %v1021_v56 = vadd.f32 %v1020_v54, %v1019_v51 }
 0x2ed   : > { %s2359_s17 = spop %1290 }
 0x2f1   : > { %s2361_s21 = spop %1292 }
 0x2f2   : > { %s763_s16 = sadd.f32 %s2361_s21, %s2359_s17  ;;  %s1295_s12 = spop %1294 }
 0x2f3   : > { %s777_s3 = smax.f32 %s1814_s22, %s1295_s12  ;;  %s506_s12 = scalar_lea.vmem [#allocation14], %s2249_s15 }
 0x2f4   : > { %v778_v49 = vstv %s777_s3  ;;  %s1047_s3 = sshll.u32 %s506_s12, 4  ;;  %s1815_s21 = smov [#allocation14]   ;;  %s2376_s3 = int_to_ptr.vmem [resolvable:$true] %s1047_s3 }
 0x2f5   : > { %1456 = vrcp.f32 %v778_v49  ;;  %s1670_s17 = scalar_lea.vmem %s2376_s3, 16 }
 0x2f6   : > { %p1671_p9 = scmp.ne.s32.totalorder %s2376_s3, %s1670_s17 }
 0x2f8   : > { %p1672_p13 = pnand %p1671_p9, %p2526_p12 }
 0x2fa   : > { %p1673_p4 = pneg %p1672_p13 }
 0x2ff   : > { %v1457_v55 = vpop.eup %1456 }
 0x300   : > { %1296 = vpush %v1457_v55 }
 0x301   : > { %1298 = vpush %v993_v4 }
 0x302   : > { %1300 = vpush %v1008_v22 }
 0x303   : > { %1302 = vpush %v1021_v56 }
 0x331   : > { %s1297_s14 = spop %1296 }
 0x332   : > { %s1299_s8 = spop %1298  ;;  %s781_s30 = smul.f32 %s1297_s14, %s763_s16 }
 0x333   : > { %s1301_s27 = spop %1300  ;;  %s1674_s16 = sshll.u32 %s1815_s21, 4  ;;  %s1675_s16 = int_to_ptr.vmem [resolvable:$false] %s1674_s16 }
 0x334   : > { %s1303_s29 = spop %1302  ;;  %s1010_s1 = sadd.f32 %s1301_s27, %s1299_s8 }
 0x335   : > { %s1024_s23 = smax.f32 %s1814_s22, %s1303_s29  ;;  %s2525_s22 = sld [smem:[#allocation38_spill]] }
 0x336   : > { %v1025_v57 = vstv %s1024_s23  ;;  %s1676_s9 = scalar_lea.vmem %s1675_s16, 32  ;;  %p1677_p0 = scmp.lt.s32.totalorder %s2376_s3, %s1675_s16 }
 0x337   : > { %1458 = vrcp.f32 %v1025_v57  ;;  %p1678_p6 = scmp.lt.s32.totalorder %s1676_s9, %s1670_s17 }
 0x339   : > { %p1679_p7 = por %p1678_p6, %p1677_p0 }
 0x33b   : > { %s2374_s29 = scalar_lea.hbm %s2525_s22, %s1257_s20  ;;  %p1680_p11 = pnand %p1679_p7, %p1673_p4 }
 0x341   : > { %v1459_v28 = vpop.eup %1458 }
 0x342   : > { %1304 = vpush %v1459_v28 }
 0x373   : > { %s1305_s7 = spop %1304 }
 0x374   : > { %s1028_s19 = smul.f32 %s1305_s7, %s1010_s1 }
 0x376   : > { %s1029_s0 = sadd.f32 %s1028_s19, %s781_s30 }
 0x378   : > { %v1030_v58 = vstv %s1029_s0 }
 0x379   : > { %1031 = vst [vmem:[%s506_s12] sm:$0x1] %v1030_v58 }
 0x37a   : > { %1683 = shalt.err (!%p1680_p11)
}
 0x37b   : > { %s1684_s0 = scalar_lea.hbm %s2374_s29, 16  ;;  %s1688_s15 = scalar_lea.hbm %s2525_s22, 64 }
 0x37c   : > { %p1685_p3 = scmp.ne.s32.totalorder %s2374_s29, %s1684_s0  ;;  %p1689_p8 = scmp.lt.u32.totalorder %s2374_s29, %s2525_s22 }
 0x37d   : > { %p1690_p1 = scmp.lt.u32.totalorder %s1688_s15, %s1684_s0  ;;  %p1692_p9 = scmp.lt.u32.totalorder %s1684_s0, %s2374_s29 }
 0x37e   : > { %p1686_p2 = pnand %p1685_p3, %p2526_p12 }
 0x37f   : > { %p1691_p5 = por %p1690_p1, %p1689_p8 }
 0x380   : > { %p1687_p10 = pneg %p1686_p2 }
 0x381   : > { %p1693_p13 = por %p1692_p9, %p1691_p5 }
 0x383   : > { %p1694_p4 = pnand %p1693_p13, %p1687_p10 }
 0x385   : > { %1697 = shalt.err (!%p1694_p4)
}
 0x386   : > { %1320 = dma.vmem_to_hbm [thread:$0]  (%p2526_p12), %s2376_s3, 16, %s2374_s29, %s1033_s5  }
 0x387 PF: > { %s2527_s27 = sld [smem:[#allocation20_spill]]  ;;  %p1349_p0 = scmp.ge.s32.totalorder %s1804_s11, 2 }
 0x388   : > { %p2528_p6 = scmp.ne.s32.totalorder %s2501_s25, 0 }
 0x38a   : > { %p1345_p7 = pnand %p1349_p0, %p2528_p6 }
 0x38d   : > { %s1059_s23 = sand.u32 1, %s2527_s27  }
 0x38e   : > { %s1060_s10 = scalar_lea.sflag [#allocation4], %s1059_s23 }
 0x38f   : > { %1759 = dma.done.wait (!%p1345_p7), %s1060_s10, 16  }
 0x390   : > { %1761 = vsyncadd (!%p1345_p7), %s1060_s10, 4294967280  ;;  %s32_s11 = sadd.s32 1, %s1804_s11   ;;  %s2529_s24 = sld [smem:[#allocation21_spill]] }
 0x391   : > { %p29_p11 = scmp.ge.s32.totalorder %s32_s11, 6   ;;  %s2530_s13 = sld [smem:[#allocation22_spill]] }
 0x392   : > { %s2531_s29 = sld [smem:[#allocation31_spill]]  ;;  %s2532_s30 = sld [smem:[#allocation25_spill]] }
 0x393   : > { %s2533_s8 = sld [smem:[#allocation26_spill]]  ;;  %s2534_s9 = sld [smem:[#allocation28_spill]] }
 0x394   : > { %s2535_s10 = sld [smem:[#allocation29_spill]]  ;;  %s2536_s25 = smov %s1772_s26 }
 0x395   : > { %s2537_s26 = smov %s2053_s18  ;;  %s2538_s27 = smov %s1780_s28 }
 0x396   :  { %31 = sbr.rel (!%p29_p11) target bundleno = 23 (0x17), region = 165 }
 0x397   : > { %s2539_s28 = smov %s2530_s13 }
 0x39d   :  { %1064 = vsyncpa [#allocation3], 1 }
 0x39e   :  { %1066 = vsyncpa [#allocation3 + $0x1], 1 }
 0x39f   :  { %1067 = vsyncpa [#allocation6], 1 }
 0x3a0   :  { %1069 = vsyncpa [#allocation6 + $0x1], 1 }
 0x3a1   :  { %1070 = vsyncpa [#allocation9], 1 }
 0x3a2   :  { %1072 = vsyncpa [#allocation9 + $0x1], 1 }
 0x3a3   :  { %1073 = vsyncpa [#allocation12], 1 }
 0x3a4   :  { %1075 = vsyncpa [#allocation12 + $0x1], 1 }
 0x3a5   :  { %1076 = vsyncpa [#allocation4], 1 }
 0x3a6   :  { %1078 = vsyncpa [#allocation4 + $0x1], 1 }

</bundles_post_ra>
